<compile_context>
chip_gen: v6e
topology: v6e:2x2x1
jax: 0.10.0
libtpu: 0.0.40
codegen_flags: <defaults>
</compile_context>

<pallas_src>
import math

import jax
import jax.numpy as jnp
from jax.experimental import pallas as pl
from jax.experimental.pallas import tpu as pltpu


# ---------------- fused per-graph Pallas kernel ----------------

def _make_kernel(n, k, num_layers):
    inv_k = 1.0 / float(k)
    HI = jax.lax.Precision.HIGHEST

    def kernel(x_ref, a_ref, w1_ref, cb_ref, cw_ref, p_ref,
               l1w_ref, l1b_ref, l2w_ref, l2b_ref, o_ref):
        a = a_ref[...]                       # (n, n) normalized adjacency, shared across batch
        x = x_ref[0]                         # (n, Fin) this graph's node features

        # ---- conv1 + relu:  (A @ X) @ W1   (Fin < H, so associate left) ----
        ax = jnp.dot(a, x, preferred_element_type=jnp.float32, precision=HI)
        h = jnp.dot(ax, w1_ref[...], preferred_element_type=jnp.float32,
                    precision=HI) + cb_ref[0:1, :]
        h = jnp.maximum(h, 0.0)
        hs = [h]

        # ---- remaining convs:  A @ (h @ Wi) + b ----
        for i in range(num_layers - 1):
            hw = jnp.dot(h, cw_ref[i], preferred_element_type=jnp.float32, precision=HI)
            h = jnp.dot(a, hw, preferred_element_type=jnp.float32,
                        precision=HI) + cb_ref[i + 1:i + 2, :]
            h = jnp.maximum(h, 0.0)
            hs.append(h)

        # ---- TopKPooling score s[i] = x_cat[i] . p / ||p||, accumulated slab-wise ----
        # (x_cat never materialized; p is pre-normalized & de-interleaved to per-layer rows.)
        s_col = jnp.zeros((n, 1), jnp.float32)
        for l in range(num_layers):
            s_col = s_col + jnp.sum(hs[l] * p_ref[l:l + 1, :], axis=1, keepdims=True)

        # ---- per-graph top-k membership by rank counting ----
        # Both compare operands derived from the SAME score array -> consistent ties,
        # exactly k survivors, so the folded 1/k mean normalization is exact.
        si = jnp.broadcast_to(s_col, (n, n))          # si[i, j] = s[i]
        sj = si.T                                     # sj[i, j] = s[j]
        row_i = jax.lax.broadcasted_iota(jnp.int32, (n, n), 0)
        col_j = jax.lax.broadcasted_iota(jnp.int32, (n, n), 1)
        beats = (sj > si) | ((sj == si) & (col_j < row_i))      # stable tie-break (low idx wins)
        cnt = jnp.sum(jnp.where(beats, 1.0, 0.0), axis=1, keepdims=True)   # (n, 1) rank
        keep = jnp.where(cnt < float(k), 1.0, 0.0)                          # (n, 1)

        # tanh gate * membership, with global_mean_pool's 1/k folded in
        gate = jnp.tanh(s_col) * keep * inv_k                               # (n, 1)

        # ---- gated mean pool + lin1, accumulated slab-wise (no concat) ----
        h1 = l1b_ref[...]                                                   # (1, Hfc)
        for l in range(num_layers):
            pooled_l = jnp.sum(hs[l] * gate, axis=0, keepdims=True)         # (1, H)
            h1 = h1 + jnp.dot(pooled_l, l1w_ref[l],
                              preferred_element_type=jnp.float32, precision=HI)
        h1 = jnp.maximum(h1, 0.0)
        # TODO(synk): dropout(p=0.5) omitted — inference mode (identity).

        logits = jnp.dot(h1, l2w_ref[...], preferred_element_type=jnp.float32,
                         precision=HI) + l2b_ref[...]
        m = jnp.max(logits, axis=-1, keepdims=True)
        lse = m + jnp.log(jnp.sum(jnp.exp(logits - m), axis=-1, keepdims=True))
        o_ref[0] = logits - lse

    return kernel


# ---------------- plain-JAX prep (one-time, tiny) ----------------

def build_norm_adj(edge_index, n):
    src, dst = edge_index[0], edge_index[1]
    a = jnp.zeros((n, n), jnp.float32).at[dst, src].set(1.0)
    a = jnp.maximum(a, jnp.eye(n, dtype=jnp.float32))       # add self loops
    deg = a.sum(axis=1)
    d_inv_sqrt = jnp.where(deg > 0, 1.0 / jnp.sqrt(deg), 0.0)
    return d_inv_sqrt[:, None] * a * d_inv_sqrt[None, :]


def gcn_model_forward(params, x, batch, a_hat, num_layers, topk_ratio=0.5):
    del batch  # unused in the reference forward (batch_i comes from TopKPooling)
    bs, n, fin = x.shape
    hidden = params["conv1_w"].shape[1]
    hidden_fc = params["lin1_w"].shape[1]
    n_classes = params["lin2_w"].shape[1]
    k = int(math.ceil(topk_ratio * n))

    # torch.stack(xs, -1).view interleaves layer channels (feature j = chan*L + layer).
    # The kernel consumes per-layer activations directly, so de-interleave the consumers
    # (topk p, lin1 rows) into per-layer slabs once at prep time.
    p = params["topk_p"]
    p_hat = (p / jnp.linalg.norm(p)).reshape(hidden, num_layers).T            # (L, H)
    l1w = params["lin1_w"].reshape(hidden, num_layers, hidden_fc).transpose(1, 0, 2)  # (L, H, Hfc)

    cb = jnp.concatenate([params["conv1_b"].reshape(1, hidden),
                          jnp.stack(list(params["convs_b"]), axis=0)], axis=0)  # (L, H)
    if num_layers > 1:
        cw = jnp.stack(list(params["convs_w"]), axis=0)                          # (L-1, H, H)
    else:
        cw = jnp.zeros((1, hidden, hidden), jnp.float32)   # unused placeholder

    kernel = _make_kernel(n, k, num_layers)

    in_specs = [
        pl.BlockSpec((1, n, fin), lambda b: (b, 0, 0)),                      # x  (per graph)
        pl.BlockSpec((n, n), lambda b: (0, 0)),                              # a_hat (shared)
        pl.BlockSpec((fin, hidden), lambda b: (0, 0)),                       # conv1 W
        pl.BlockSpec((num_layers, hidden), lambda b: (0, 0)),                # all conv biases
        pl.BlockSpec(cw.shape, lambda b: (0, 0, 0)),                         # conv2.. weights
        pl.BlockSpec((num_layers, hidden), lambda b: (0, 0)),                # topk p per layer
        pl.BlockSpec((num_layers, hidden, hidden_fc), lambda b: (0, 0, 0)),  # lin1 W per layer
        pl.BlockSpec((1, hidden_fc), lambda b: (0, 0)),                      # lin1 b
        pl.BlockSpec((hidden_fc, n_classes), lambda b: (0, 0)),              # lin2 W
        pl.BlockSpec((1, n_classes), lambda b: (0, 0)),                      # lin2 b
    ]
    out_specs = pl.BlockSpec((1, 1, n_classes), lambda b: (b, 0, 0))

    out = pl.pallas_call(
        kernel,
        out_shape=jax.ShapeDtypeStruct((bs, 1, n_classes), jnp.float32),
        grid=(bs,),
        in_specs=in_specs,
        out_specs=out_specs,
        compiler_params=pltpu.CompilerParams(
            dimension_semantics=("parallel",),
            vmem_limit_bytes=32 * 1024 * 1024,
        ),
    )(x, a_hat,
      params["conv1_w"], cb, cw, p_hat,
      l1w, params["lin1_b"].reshape(1, hidden_fc),
      params["lin2_w"], params["lin2_b"].reshape(1, n_classes))

    return out.reshape(bs, n_classes)


if __name__ == "__main__":
    bs, num_nodes = 2, 16
    n_features, hidden_gcn, hidden_fc = 8, 16, 32
    num_layers, n_classes = 3, 4

    # deterministic ring graph (undirected, no self loops), edge_index (2, 32)
    src = jnp.arange(num_nodes, dtype=jnp.int32)
    dst = (src + 1) % num_nodes
    edge_index = jnp.stack([jnp.concatenate([src, dst]),
                            jnp.concatenate([dst, src])], axis=0)
    a_hat = build_norm_adj(edge_index, num_nodes)

    key = jax.random.PRNGKey(0)
    keys = jax.random.split(key, 12)
    x = jax.random.normal(keys[0], (bs, num_nodes, n_features), jnp.float32)
    batch = jnp.zeros((bs, num_nodes), jnp.int32)

    def init(k, shape, scale=0.1):
        return scale * jax.random.normal(k, shape, jnp.float32)

    params = {
        "conv1_w": init(keys[1], (n_features, hidden_gcn)),
        "conv1_b": init(keys[2], (hidden_gcn,)),
        "convs_w": [init(keys[3], (hidden_gcn, hidden_gcn)),
                    init(keys[4], (hidden_gcn, hidden_gcn))],
        "convs_b": [init(keys[5], (hidden_gcn,)),
                    init(keys[6], (hidden_gcn,))],
        "topk_p": init(keys[7], (num_layers * hidden_gcn,)),
        "lin1_w": init(keys[8], (num_layers * hidden_gcn, hidden_fc)),
        "lin1_b": init(keys[9], (hidden_fc,)),
        "lin2_w": init(keys[10], (hidden_fc, n_classes)),
        "lin2_b": init(keys[11], (n_classes,)),
    }

    fwd = jax.jit(gcn_model_forward, static_argnames=("num_layers", "topk_ratio"))
    out = fwd(params, x, batch, a_hat, num_layers=num_layers)
    out = jax.block_until_ready(out)

    assert out.shape == (bs, n_classes)
    assert bool(jnp.all(jnp.isfinite(out)))
    # log_softmax rows must exponentiate-sum to 1
    assert bool(jnp.allclose(jnp.sum(jnp.exp(out), axis=-1), 1.0, atol=1e-5))
    print("KERNEL_OK")
</pallas_src>

<mosaic_0001>
module attributes {stable_mosaic.version = 11 : i64} {
  func.func @kernel(%arg0: i32, %arg1: memref<1x16x8xf32, #tpu.memory_space<vmem>>, %arg2: memref<16x16xf32, #tpu.memory_space<vmem>>, %arg3: memref<8x16xf32, #tpu.memory_space<vmem>>, %arg4: memref<3x16xf32, #tpu.memory_space<vmem>>, %arg5: memref<2x16x16xf32, #tpu.memory_space<vmem>>, %arg6: memref<3x16xf32, #tpu.memory_space<vmem>>, %arg7: memref<3x16x32xf32, #tpu.memory_space<vmem>>, %arg8: memref<1x32xf32, #tpu.memory_space<vmem>>, %arg9: memref<32x4xf32, #tpu.memory_space<vmem>>, %arg10: memref<1x4xf32, #tpu.memory_space<vmem>>, %arg11: memref<1x1x4xf32, #tpu.memory_space<vmem>>) attributes {dimension_semantics = [#tpu.dimension_semantics<parallel>], iteration_bounds = array<i64: 2>, scalar_prefetch = 0 : i64, scratch_operands = 0 : i64, tpu.core_type = #tpu.core_type<tc>, window_params = [{transform_indices = @transform_0, window_bounds = array<i64: 1, 16, 8>}, {pipeline_mode = #tpu.pipeline_mode<synchronous>, transform_indices = @transform_1, window_bounds = array<i64: 16, 16>}, {pipeline_mode = #tpu.pipeline_mode<synchronous>, transform_indices = @transform_2, window_bounds = array<i64: 8, 16>}, {pipeline_mode = #tpu.pipeline_mode<synchronous>, transform_indices = @transform_3, window_bounds = array<i64: 3, 16>}, {pipeline_mode = #tpu.pipeline_mode<synchronous>, transform_indices = @transform_4, window_bounds = array<i64: 2, 16, 16>}, {pipeline_mode = #tpu.pipeline_mode<synchronous>, transform_indices = @transform_5, window_bounds = array<i64: 3, 16>}, {pipeline_mode = #tpu.pipeline_mode<synchronous>, transform_indices = @transform_6, window_bounds = array<i64: 3, 16, 32>}, {pipeline_mode = #tpu.pipeline_mode<synchronous>, transform_indices = @transform_7, window_bounds = array<i64: 1, 32>}, {pipeline_mode = #tpu.pipeline_mode<synchronous>, transform_indices = @transform_8, window_bounds = array<i64: 32, 4>}, {pipeline_mode = #tpu.pipeline_mode<synchronous>, transform_indices = @transform_9, window_bounds = array<i64: 1, 4>}, {transform_indices = @transform_10, window_bounds = array<i64: 1, 1, 4>}]} {
    %c0 = arith.constant 0 : index
    %c0_0 = arith.constant 0 : index
    %0 = vector.load %arg2[%c0, %c0_0] : memref<16x16xf32, #tpu.memory_space<vmem>>, vector<16x16xf32>
    %c0_1 = arith.constant 0 : index
    %c0_2 = arith.constant 0 : index
    %c0_3 = arith.constant 0 : index
    %1 = vector.load %arg1[%c0_1, %c0_2, %c0_3] : memref<1x16x8xf32, #tpu.memory_space<vmem>>, vector<1x16x8xf32>
    %2 = vector.shape_cast %1 : vector<1x16x8xf32> to vector<16x8xf32>
    %cst = arith.constant dense<0.000000e+00> : vector<16x8xf32>
    %3 = tpu.matmul %0, %2, %cst {dimension_numbers = #tpu.dot_dimension_numbers<[1], [0], [0], [1], [0, 0, 1, 1], [], []>, precision = #tpu.contract_precision<fp32>} : vector<16x16xf32>, vector<16x8xf32>, vector<16x8xf32> -> vector<16x8xf32>
    %c0_4 = arith.constant 0 : index
    %c0_5 = arith.constant 0 : index
    %4 = vector.load %arg3[%c0_4, %c0_5] : memref<8x16xf32, #tpu.memory_space<vmem>>, vector<8x16xf32>
    %cst_6 = arith.constant dense<0.000000e+00> : vector<16x16xf32>
    %5 = tpu.matmul %3, %4, %cst_6 {dimension_numbers = #tpu.dot_dimension_numbers<[1], [0], [0], [1], [0, 0, 1, 1], [], []>, precision = #tpu.contract_precision<fp32>} : vector<16x8xf32>, vector<8x16xf32>, vector<16x16xf32> -> vector<16x16xf32>
    %c0_7 = arith.constant 0 : index
    %c0_8 = arith.constant 0 : index
    %6 = vector.load %arg4[%c0_7, %c0_8] : memref<3x16xf32, #tpu.memory_space<vmem>>, vector<1x16xf32>
    %7 = vector.broadcast %6 : vector<1x16xf32> to vector<16x16xf32>
    %8 = arith.addf %5, %7 : vector<16x16xf32>
    %cst_9 = arith.constant 0.000000e+00 : f32
    %9 = vector.broadcast %cst_9 : f32 to vector<16x16xf32>
    %10 = arith.maximumf %8, %9 : vector<16x16xf32>
    %c0_10 = arith.constant 0 : index
    %c0_11 = arith.constant 0 : index
    %c0_12 = arith.constant 0 : index
    %11 = vector.load %arg5[%c0_10, %c0_11, %c0_12] : memref<2x16x16xf32, #tpu.memory_space<vmem>>, vector<1x16x16xf32>
    %12 = vector.shape_cast %11 : vector<1x16x16xf32> to vector<16x16xf32>
    %cst_13 = arith.constant dense<0.000000e+00> : vector<16x16xf32>
    %13 = tpu.matmul %10, %12, %cst_13 {dimension_numbers = #tpu.dot_dimension_numbers<[1], [0], [0], [1], [0, 0, 1, 1], [], []>, precision = #tpu.contract_precision<fp32>} : vector<16x16xf32>, vector<16x16xf32>, vector<16x16xf32> -> vector<16x16xf32>
    %cst_14 = arith.constant dense<0.000000e+00> : vector<16x16xf32>
    %14 = tpu.matmul %0, %13, %cst_14 {dimension_numbers = #tpu.dot_dimension_numbers<[1], [0], [0], [1], [0, 0, 1, 1], [], []>, precision = #tpu.contract_precision<fp32>} : vector<16x16xf32>, vector<16x16xf32>, vector<16x16xf32> -> vector<16x16xf32>
    %c1 = arith.constant 1 : index
    %c0_15 = arith.constant 0 : index
    %15 = vector.load %arg4[%c1, %c0_15] : memref<3x16xf32, #tpu.memory_space<vmem>>, vector<1x16xf32>
    %16 = vector.broadcast %15 : vector<1x16xf32> to vector<16x16xf32>
    %17 = arith.addf %14, %16 : vector<16x16xf32>
    %cst_16 = arith.constant 0.000000e+00 : f32
    %18 = vector.broadcast %cst_16 : f32 to vector<16x16xf32>
    %19 = arith.maximumf %17, %18 : vector<16x16xf32>
    %c1_17 = arith.constant 1 : index
    %c0_18 = arith.constant 0 : index
    %c0_19 = arith.constant 0 : index
    %20 = vector.load %arg5[%c1_17, %c0_18, %c0_19] : memref<2x16x16xf32, #tpu.memory_space<vmem>>, vector<1x16x16xf32>
    %21 = vector.shape_cast %20 : vector<1x16x16xf32> to vector<16x16xf32>
    %cst_20 = arith.constant dense<0.000000e+00> : vector<16x16xf32>
    %22 = tpu.matmul %19, %21, %cst_20 {dimension_numbers = #tpu.dot_dimension_numbers<[1], [0], [0], [1], [0, 0, 1, 1], [], []>, precision = #tpu.contract_precision<fp32>} : vector<16x16xf32>, vector<16x16xf32>, vector<16x16xf32> -> vector<16x16xf32>
    %cst_21 = arith.constant dense<0.000000e+00> : vector<16x16xf32>
    %23 = tpu.matmul %0, %22, %cst_21 {dimension_numbers = #tpu.dot_dimension_numbers<[1], [0], [0], [1], [0, 0, 1, 1], [], []>, precision = #tpu.contract_precision<fp32>} : vector<16x16xf32>, vector<16x16xf32>, vector<16x16xf32> -> vector<16x16xf32>
    %c2 = arith.constant 2 : index
    %c0_22 = arith.constant 0 : index
    %24 = vector.load %arg4[%c2, %c0_22] : memref<3x16xf32, #tpu.memory_space<vmem>>, vector<1x16xf32>
    %25 = vector.broadcast %24 : vector<1x16xf32> to vector<16x16xf32>
    %26 = arith.addf %23, %25 : vector<16x16xf32>
    %cst_23 = arith.constant 0.000000e+00 : f32
    %27 = vector.broadcast %cst_23 : f32 to vector<16x16xf32>
    %28 = arith.maximumf %26, %27 : vector<16x16xf32>
    %cst_24 = arith.constant 0.000000e+00 : f32
    %29 = vector.broadcast %cst_24 : f32 to vector<16x1xf32>
    %c0_25 = arith.constant 0 : index
    %c0_26 = arith.constant 0 : index
    %30 = vector.load %arg6[%c0_25, %c0_26] : memref<3x16xf32, #tpu.memory_space<vmem>>, vector<1x16xf32>
    %31 = vector.broadcast %30 : vector<1x16xf32> to vector<16x16xf32>
    %32 = arith.mulf %10, %31 : vector<16x16xf32>
    %cst_27 = arith.constant dense<0.000000e+00> : vector<16xf32>
    %33 = vector.multi_reduction <add>, %32, %cst_27 [1] : vector<16x16xf32> to vector<16xf32>
    %34 = vector.shape_cast %33 : vector<16xf32> to vector<16x1xf32>
    %35 = arith.addf %29, %34 : vector<16x1xf32>
    %c1_28 = arith.constant 1 : index
    %c0_29 = arith.constant 0 : index
    %36 = vector.load %arg6[%c1_28, %c0_29] : memref<3x16xf32, #tpu.memory_space<vmem>>, vector<1x16xf32>
    %37 = vector.broadcast %36 : vector<1x16xf32> to vector<16x16xf32>
    %38 = arith.mulf %19, %37 : vector<16x16xf32>
    %cst_30 = arith.constant dense<0.000000e+00> : vector<16xf32>
    %39 = vector.multi_reduction <add>, %38, %cst_30 [1] : vector<16x16xf32> to vector<16xf32>
    %40 = vector.shape_cast %39 : vector<16xf32> to vector<16x1xf32>
    %41 = arith.addf %35, %40 : vector<16x1xf32>
    %c2_31 = arith.constant 2 : index
    %c0_32 = arith.constant 0 : index
    %42 = vector.load %arg6[%c2_31, %c0_32] : memref<3x16xf32, #tpu.memory_space<vmem>>, vector<1x16xf32>
    %43 = vector.broadcast %42 : vector<1x16xf32> to vector<16x16xf32>
    %44 = arith.mulf %28, %43 : vector<16x16xf32>
    %cst_33 = arith.constant dense<0.000000e+00> : vector<16xf32>
    %45 = vector.multi_reduction <add>, %44, %cst_33 [1] : vector<16x16xf32> to vector<16xf32>
    %46 = vector.shape_cast %45 : vector<16xf32> to vector<16x1xf32>
    %47 = arith.addf %41, %46 : vector<16x1xf32>
    %48 = vector.shape_cast %47 : vector<16x1xf32> to vector<16x1xf32>
    %49 = vector.broadcast %48 : vector<16x1xf32> to vector<16x16xf32>
    %50 = tpu.transpose %49, [1, 0] : vector<16x16xf32> -> vector<16x16xf32>
    %51 = tpu.iota {dimensions = array<i32: 0>} : vector<16x16xi32>
    %52 = tpu.iota {dimensions = array<i32: 1>} : vector<16x16xi32>
    %53 = arith.cmpf ogt, %50, %49 : vector<16x16xf32>
    %54 = arith.cmpf oeq, %50, %49 : vector<16x16xf32>
    %55 = arith.cmpi slt, %52, %51 : vector<16x16xi32>
    %56 = arith.andi %54, %55 : vector<16x16xi1>
    %57 = arith.ori %53, %56 : vector<16x16xi1>
    %cst_34 = arith.constant 1.000000e+00 : f32
    %cst_35 = arith.constant 0.000000e+00 : f32
    %58 = vector.broadcast %cst_34 : f32 to vector<16x16xf32>
    %59 = vector.broadcast %cst_35 : f32 to vector<16x16xf32>
    %60 = arith.select %57, %58, %59 : vector<16x16xi1>, vector<16x16xf32>
    %cst_36 = arith.constant dense<0.000000e+00> : vector<16xf32>
    %61 = vector.multi_reduction <add>, %60, %cst_36 [1] : vector<16x16xf32> to vector<16xf32>
    %62 = vector.shape_cast %61 : vector<16xf32> to vector<16x1xf32>
    %cst_37 = arith.constant 8.000000e+00 : f32
    %63 = vector.broadcast %cst_37 : f32 to vector<16x1xf32>
    %64 = arith.cmpf olt, %62, %63 : vector<16x1xf32>
    %cst_38 = arith.constant 1.000000e+00 : f32
    %cst_39 = arith.constant 0.000000e+00 : f32
    %65 = vector.broadcast %cst_38 : f32 to vector<16x1xf32>
    %66 = vector.broadcast %cst_39 : f32 to vector<16x1xf32>
    %67 = arith.select %64, %65, %66 : vector<16x1xi1>, vector<16x1xf32>
    %68 = math.tanh %47 : vector<16x1xf32>
    %69 = arith.mulf %68, %67 : vector<16x1xf32>
    %cst_40 = arith.constant 1.250000e-01 : f32
    %70 = vector.broadcast %cst_40 : f32 to vector<16x1xf32>
    %71 = arith.mulf %69, %70 : vector<16x1xf32>
    %c0_41 = arith.constant 0 : index
    %c0_42 = arith.constant 0 : index
    %72 = vector.load %arg8[%c0_41, %c0_42] : memref<1x32xf32, #tpu.memory_space<vmem>>, vector<1x32xf32>
    %73 = vector.broadcast %71 : vector<16x1xf32> to vector<16x16xf32>
    %74 = arith.mulf %10, %73 : vector<16x16xf32>
    %cst_43 = arith.constant dense<0.000000e+00> : vector<16xf32>
    %75 = vector.multi_reduction <add>, %74, %cst_43 [0] : vector<16x16xf32> to vector<16xf32>
    %76 = vector.shape_cast %75 : vector<16xf32> to vector<1x16xf32>
    %c0_44 = arith.constant 0 : index
    %c0_45 = arith.constant 0 : index
    %c0_46 = arith.constant 0 : index
    %77 = vector.load %arg7[%c0_44, %c0_45, %c0_46] : memref<3x16x32xf32, #tpu.memory_space<vmem>>, vector<1x16x32xf32>
    %78 = vector.shape_cast %77 : vector<1x16x32xf32> to vector<16x32xf32>
    %cst_47 = arith.constant dense<0.000000e+00> : vector<1x32xf32>
    %79 = tpu.matmul %76, %78, %cst_47 {dimension_numbers = #tpu.dot_dimension_numbers<[1], [0], [0], [1], [0, 0, 1, 1], [], []>, precision = #tpu.contract_precision<fp32>} : vector<1x16xf32>, vector<16x32xf32>, vector<1x32xf32> -> vector<1x32xf32>
    %80 = arith.addf %72, %79 : vector<1x32xf32>
    %81 = vector.broadcast %71 : vector<16x1xf32> to vector<16x16xf32>
    %82 = arith.mulf %19, %81 : vector<16x16xf32>
    %cst_48 = arith.constant dense<0.000000e+00> : vector<16xf32>
    %83 = vector.multi_reduction <add>, %82, %cst_48 [0] : vector<16x16xf32> to vector<16xf32>
    %84 = vector.shape_cast %83 : vector<16xf32> to vector<1x16xf32>
    %c1_49 = arith.constant 1 : index
    %c0_50 = arith.constant 0 : index
    %c0_51 = arith.constant 0 : index
    %85 = vector.load %arg7[%c1_49, %c0_50, %c0_51] : memref<3x16x32xf32, #tpu.memory_space<vmem>>, vector<1x16x32xf32>
    %86 = vector.shape_cast %85 : vector<1x16x32xf32> to vector<16x32xf32>
    %cst_52 = arith.constant dense<0.000000e+00> : vector<1x32xf32>
    %87 = tpu.matmul %84, %86, %cst_52 {dimension_numbers = #tpu.dot_dimension_numbers<[1], [0], [0], [1], [0, 0, 1, 1], [], []>, precision = #tpu.contract_precision<fp32>} : vector<1x16xf32>, vector<16x32xf32>, vector<1x32xf32> -> vector<1x32xf32>
    %88 = arith.addf %80, %87 : vector<1x32xf32>
    %89 = vector.broadcast %71 : vector<16x1xf32> to vector<16x16xf32>
    %90 = arith.mulf %28, %89 : vector<16x16xf32>
    %cst_53 = arith.constant dense<0.000000e+00> : vector<16xf32>
    %91 = vector.multi_reduction <add>, %90, %cst_53 [0] : vector<16x16xf32> to vector<16xf32>
    %92 = vector.shape_cast %91 : vector<16xf32> to vector<1x16xf32>
    %c2_54 = arith.constant 2 : index
    %c0_55 = arith.constant 0 : index
    %c0_56 = arith.constant 0 : index
    %93 = vector.load %arg7[%c2_54, %c0_55, %c0_56] : memref<3x16x32xf32, #tpu.memory_space<vmem>>, vector<1x16x32xf32>
    %94 = vector.shape_cast %93 : vector<1x16x32xf32> to vector<16x32xf32>
    %cst_57 = arith.constant dense<0.000000e+00> : vector<1x32xf32>
    %95 = tpu.matmul %92, %94, %cst_57 {dimension_numbers = #tpu.dot_dimension_numbers<[1], [0], [0], [1], [0, 0, 1, 1], [], []>, precision = #tpu.contract_precision<fp32>} : vector<1x16xf32>, vector<16x32xf32>, vector<1x32xf32> -> vector<1x32xf32>
    %96 = arith.addf %88, %95 : vector<1x32xf32>
    %cst_58 = arith.constant 0.000000e+00 : f32
    %97 = vector.broadcast %cst_58 : f32 to vector<1x32xf32>
    %98 = arith.maximumf %96, %97 : vector<1x32xf32>
    %c0_59 = arith.constant 0 : index
    %c0_60 = arith.constant 0 : index
    %99 = vector.load %arg9[%c0_59, %c0_60] : memref<32x4xf32, #tpu.memory_space<vmem>>, vector<32x4xf32>
    %cst_61 = arith.constant dense<0.000000e+00> : vector<1x4xf32>
    %100 = tpu.matmul %98, %99, %cst_61 {dimension_numbers = #tpu.dot_dimension_numbers<[1], [0], [0], [1], [0, 0, 1, 1], [], []>, precision = #tpu.contract_precision<fp32>} : vector<1x32xf32>, vector<32x4xf32>, vector<1x4xf32> -> vector<1x4xf32>
    %c0_62 = arith.constant 0 : index
    %c0_63 = arith.constant 0 : index
    %101 = vector.load %arg10[%c0_62, %c0_63] : memref<1x4xf32, #tpu.memory_space<vmem>>, vector<1x4xf32>
    %102 = arith.addf %100, %101 : vector<1x4xf32>
    %cst_64 = arith.constant dense<0xFF800000> : vector<1xf32>
    %103 = vector.multi_reduction <maximumf>, %102, %cst_64 [1] : vector<1x4xf32> to vector<1xf32>
    %104 = vector.shape_cast %103 : vector<1xf32> to vector<1x1xf32>
    %105 = vector.broadcast %104 : vector<1x1xf32> to vector<1x4xf32>
    %106 = arith.subf %102, %105 : vector<1x4xf32>
    %107 = math.exp %106 : vector<1x4xf32>
    %cst_65 = arith.constant dense<0.000000e+00> : vector<1xf32>
    %108 = vector.multi_reduction <add>, %107, %cst_65 [1] : vector<1x4xf32> to vector<1xf32>
    %109 = vector.shape_cast %108 : vector<1xf32> to vector<1x1xf32>
    %110 = math.log %109 : vector<1x1xf32>
    %111 = arith.addf %104, %110 : vector<1x1xf32>
    %112 = vector.broadcast %111 : vector<1x1xf32> to vector<1x4xf32>
    %113 = arith.subf %102, %112 : vector<1x4xf32>
    %c0_66 = arith.constant 0 : index
    %c0_67 = arith.constant 0 : index
    %c0_68 = arith.constant 0 : index
    %114 = vector.load %arg11[%c0_66, %c0_67, %c0_68] : memref<1x1x4xf32, #tpu.memory_space<vmem>>, vector<1x1x4xf32>
    %115 = vector.shape_cast %114 : vector<1x1x4xf32> to vector<1x4xf32>
    %116 = vector.shape_cast %113 : vector<1x4xf32> to vector<1x1x4xf32>
    tpu.vector_store %arg11[%c0_66, %c0_67, %c0_68], %116 {strides = array<i32>} : memref<1x1x4xf32, #tpu.memory_space<vmem>>, vector<1x1x4xf32>,
    return
  }
  func.func @transform_0(%arg0: i32) -> (i32, i32, i32) {
    %c0_i32 = arith.constant 0 : i32
    %c0_i32_0 = arith.constant 0 : i32
    %c0_i32_1 = arith.constant 0 : i32
    return %arg0, %c0_i32, %c0_i32_0 : i32, i32, i32
  }
  func.func @transform_1(%arg0: i32) -> (i32, i32) {
    %c0_i32 = arith.constant 0 : i32
    %c0_i32_0 = arith.constant 0 : i32
    %c0_i32_1 = arith.constant 0 : i32
    return %c0_i32, %c0_i32_0 : i32, i32
  }
  func.func @transform_2(%arg0: i32) -> (i32, i32) {
    %c0_i32 = arith.constant 0 : i32
    %c0_i32_0 = arith.constant 0 : i32
    %c0_i32_1 = arith.constant 0 : i32
    return %c0_i32, %c0_i32_0 : i32, i32
  }
  func.func @transform_3(%arg0: i32) -> (i32, i32) {
    %c0_i32 = arith.constant 0 : i32
    %c0_i32_0 = arith.constant 0 : i32
    %c0_i32_1 = arith.constant 0 : i32
    return %c0_i32, %c0_i32_0 : i32, i32
  }
  func.func @transform_4(%arg0: i32) -> (i32, i32, i32) {
    %c0_i32 = arith.constant 0 : i32
    %c0_i32_0 = arith.constant 0 : i32
    %c0_i32_1 = arith.constant 0 : i32
    %c0_i32_2 = arith.constant 0 : i32
    return %c0_i32, %c0_i32_0, %c0_i32_1 : i32, i32, i32
  }
  func.func @transform_5(%arg0: i32) -> (i32, i32) {
    %c0_i32 = arith.constant 0 : i32
    %c0_i32_0 = arith.constant 0 : i32
    %c0_i32_1 = arith.constant 0 : i32
    return %c0_i32, %c0_i32_0 : i32, i32
  }
  func.func @transform_6(%arg0: i32) -> (i32, i32, i32) {
    %c0_i32 = arith.constant 0 : i32
    %c0_i32_0 = arith.constant 0 : i32
    %c0_i32_1 = arith.constant 0 : i32
    %c0_i32_2 = arith.constant 0 : i32
    return %c0_i32, %c0_i32_0, %c0_i32_1 : i32, i32, i32
  }
  func.func @transform_7(%arg0: i32) -> (i32, i32) {
    %c0_i32 = arith.constant 0 : i32
    %c0_i32_0 = arith.constant 0 : i32
    %c0_i32_1 = arith.constant 0 : i32
    return %c0_i32, %c0_i32_0 : i32, i32
  }
  func.func @transform_8(%arg0: i32) -> (i32, i32) {
    %c0_i32 = arith.constant 0 : i32
    %c0_i32_0 = arith.constant 0 : i32
    %c0_i32_1 = arith.constant 0 : i32
    return %c0_i32, %c0_i32_0 : i32, i32
  }
  func.func @transform_9(%arg0: i32) -> (i32, i32) {
    %c0_i32 = arith.constant 0 : i32
    %c0_i32_0 = arith.constant 0 : i32
    %c0_i32_1 = arith.constant 0 : i32
    return %c0_i32, %c0_i32_0 : i32, i32
  }
  func.func @transform_10(%arg0: i32) -> (i32, i32, i32) {
    %c0_i32 = arith.constant 0 : i32
    %c0_i32_0 = arith.constant 0 : i32
    %c0_i32_1 = arith.constant 0 : i32
    return %arg0, %c0_i32, %c0_i32_0 : i32, i32, i32
  }
}

</mosaic_0001>

<bundles_post_ra>
// kernel: gcn_model_forward.1
= control target key start
LH: loop header
LB: loop body
LE: loop exit
PB: predicated region body
PF: predicated region fallthrough
CT: control target
= control target key end

     0   :  { %s7013_s0 = inlined_call_operand.vmem [shape: f32[2,16,8], index: 0, kind: input, shape index: {}]   ;;  %s7014_s1 = inlined_call_operand.vmem [shape: f32[16,16], index: 1, kind: input, shape index: {}]   ;;  %s7015_s2 = inlined_call_operand.vmem [shape: f32[8,16], index: 2, kind: input, shape index: {}]   ;;  %s7016_s3 = inlined_call_operand.vmem [shape: f32[3,16], index: 3, kind: input, shape index: {}]   ;;  %s7017_s4 = inlined_call_operand.vmem [shape: f32[2,16,16], index: 4, kind: input, shape index: {}]   ;;  %s7018_s5 = inlined_call_operand.vmem [shape: f32[3,16], index: 5, kind: input, shape index: {}]   ;;  %s7019_s6 = inlined_call_operand.vmem [shape: f32[3,16,32], index: 6, kind: input, shape index: {}]   ;;  %s7020_s7 = inlined_call_operand.vmem [shape: f32[1,32], index: 7, kind: input, shape index: {}]   ;;  %s7021_s8 = inlined_call_operand.vmem [shape: f32[32,4], index: 8, kind: input, shape index: {}]   ;;  %s7022_s9 = inlined_call_operand.vmem [shape: f32[1,4], index: 9, kind: input, shape index: {}]   ;;  %s7023_s10 = inlined_call_operand.hbm [shape: f32[2,1,4], index: 10, kind: output, shape index: {}]  }
   0x1   :  { %7024 = sst [smem:[#allocation5_spill]] %s7013_s0 }
   0x2   :  { %15 = vsyncpa [#allocation3], 0 }
   0x3   :  { %17 = vsyncpa [#allocation3 + $0x1], 0  ;;  %s6377_s13 = smov 0   ;;  %s6379_s14 = smov 0  }
   0x4   :  { %s6381_s15 = smov 0   ;;  %s6383_s16 = smov 0  }
   0x5 LB: > { %s6398_s17 = sadd.s32 4294967295, %s6317_s16   ;;  %s5532_s18 = sadd.s32 4294967294, %s6317_s16   ;;  %s6317_s16 = sphi %s6383_s16, %s7031_s16   ;;  %s6313_s15 = sphi %s6381_s15, %s7030_s15   ;;  %s6309_s14 = sphi %s6379_s14, %s7029_s14   ;;  %s6305_s13 = sphi %s6377_s13, %s7028_s13  }
   0x6   : > { %s6402_s19 = sadd.s32 1, %s6317_s16   ;;  %s245_s20 = sadd.s32 1, %s6313_s15 }
   0x7   : > { %s242_s21 = ssub.s32 %s6317_s16, %s6402_s19  ;;  %p255_p0 = scmp.ne.s32.totalorder %s6313_s15, %s6309_s14 }
   0x8   : > { %p243_p1 = scmp.eq.s32.totalorder %s242_s21, 0  ;;  %p256_p2 = scmp.eq.s32.totalorder %s6398_s17, 1 }
   0x9   : > { %p261_p3 = scmp.ne.s32.totalorder %s6309_s14, %s6305_s13  ;;  %p262_p4 = scmp.eq.s32.totalorder %s5532_s18, 1 }
   0xa   : > { %s6413_s22 = scalar_select %p243_p1, %s6313_s15, %s245_s20  }
   0xb   : > { %p6415_p5 = por %p256_p2, %p255_p0  ;;  %p6419_p6 = por %p262_p4, %p261_p3 }
   0xc   : > { %p5535_p7 = scmp.ge.s32.totalorder %s6317_s16, 1  ;;  %p315_p8 = scmp.lt.s32.totalorder %s6317_s16, 3 }
   0xe   : > { %p316_p9 = pnand %p5535_p7, %p315_p8 }
   0xf   : > { %p352_p10 = scmp.lt.s32.totalorder (!%p316_p9), %s6398_s17, 1  ;;  %s7027_s0 = sld [smem:[#allocation5_spill]] (!%p316_p9) }
  0x10   : > { %319 = sbr.rel (%p316_p9) target bundleno = 2595 (0xa23), region = 60  ;;  %s350_s25 = sand.u32 (!%p316_p9), 1, %s6309_s14  }
  0x11   : > { %s5550_s26 = sshll.u32 (!%p316_p9), %s6398_s17, 4  ;;  %s351_s27 = scalar_lea.vmem (!%p316_p9), [#allocation2], %s350_s25 }
  0x12   : > { %s5477_s28 = sshll.u32 (!%p316_p9), %s351_s27, 4  ;;  %s5475_s11 = scalar_lea.hbm (!%p316_p9), %s7023_s10, %s5550_s26  ;;  %s5478_s28 = int_to_ptr.vmem [resolvable:$true] %s5477_s28 }
  0x13   : > { %s5465_s12 = scalar_lea.sflag (!%p316_p9), [#allocation3], %s350_s25  ;;  %s6321_s20 = smov (!%p316_p9), [#allocation2]  }
  0x14   : > { %s6261_s21 = sshll.u32 (!%p316_p9), %s6321_s20, 4  ;;  %s6262_s21 = int_to_ptr.vmem [resolvable:$false] %s6261_s21 }
  0x15   : > { %v357_v0 = vld [vmem:[%s7014_s1] sm:$0xff]  ;;  %vm361_vm0 = vcmask 130048   ;;  %v358_v1 = vld [vmem:[%s7014_s1 + $0x8] sm:$0xff]  ;;  %s353_s29 = scalar_select %p352_p10, %s6398_s17, 1  ;;  %vm876_vm1 = vcmask 64512   ;;  %vm6320_vm12 = vmmov 0  }
  0x16   : > { %v363_v2 = vsel %vm361_vm0, %v357_v0, 0  ;;  %v366_v3 = vsel %vm361_vm0, %v358_v1, 0  ;;  %v870_v26 = vld [vmem:[%s7015_s2] sm:$0xff]  ;;  %vm4960_vm15 = vcmask 261120   ;;  %s6263_s17 = scalar_lea.vmem %s6262_s21, 32  ;;  %p6264_p0 = scmp.lt.s32.totalorder %s5478_s28, %s6262_s21 }
  0x17   : > { %v6435_v4 = vand.u32 4294901760, %v363_v2  ;;  %v6437_v5 = vand.u32 4294901760, %v366_v3  ;;  %s5553_s30 = sshll.u32 %s353_s29, 4  ;;  %v914_v27 = vand.u32 4294901760, %v870_v26 }
  0x18   : > { %s356_s18 = scalar_lea.vmem %s7027_s0, %s5553_s30 }
  0x19   : > { %v6440_v6 = vsub.f32 %v363_v2, %v6435_v4  ;;  %v6443_v7 = vsub.f32 %v366_v3, %v6437_v5  ;;  %5787 = vmatprep.mubr.f32.mxu1 %v6435_v4  ;;  %v360_v8 = vld [vmem:[%s356_s18 + $0x8] sm:$0xff]  ;;  %v359_v9 = vld [vmem:[%s356_s18] sm:$0xff]  ;;  %v1001_v28 = vsub.f32 %v870_v26, %v914_v27  ;;  %s6257_s18 = scalar_lea.vmem %s5478_s28, 16 }
  0x1a   : > { %v397_v12 = vand.u32 4294901760, %v360_v8  ;;  %v400_v13 = vand.u32 4294901760, %v359_v9  ;;  %v1375_v2 = vld [vmem:[%s7017_s4 + $0x8] sm:$0xff]  ;;  %p6258_p11 = scmp.ne.s32.totalorder %s5478_s28, %s6257_s18  ;;  %p6265_p1 = scmp.lt.s32.totalorder %s6263_s17, %s6257_s18 }
  0x1b   : > { %v6450_v10 = vand.u32 4294901760, %v6440_v6  ;;  %v6453_v11 = vand.u32 4294901760, %v6443_v7  ;;  %v1002_v29 = vand.u32 4294901760, %v1001_v28  ;;  %v6480_v3 = vand.u32 4294901760, %v1375_v2 }
  0x1c   : > { %5776 = vmatprep.subr.mxu0 %v397_v12  ;;  %v485_v16 = vsub.f32 %v360_v8, %v397_v12  ;;  %v492_v17 = vsub.f32 %v359_v9, %v400_v13  ;;  %v1374_v8 = vld [vmem:[%s7017_s4] sm:$0xff]  ;;  %p6259_p12 = pnand %p6258_p11, %p6415_p5  ;;  %p6266_p2 = por %p6265_p1, %p6264_p0 }
  0x1d   : > { %v438_v14 = vsub.f32 %v6440_v6, %v6450_v10  ;;  %v448_v15 = vsub.f32 %v6443_v7, %v6453_v11  ;;  %5777 = vmatpush3.msra.mxu0 %v397_v12  ;;  %v1003_v30 = vsub.f32 %v1001_v28, %v1002_v29  ;;  %v6486_v9 = vsub.f32 %v1375_v2, %v6480_v3 }
  0x1e   : > { %5778 = vmatprep.subr.mxu0 %v400_v13  ;;  %v486_v20 = vand.u32 4294901760, %v485_v16  ;;  %v493_v21 = vand.u32 4294901760, %v492_v17  ;;  %p6260_p13 = pneg %p6259_p12 }
  0x1f   : > { %v6459_v18 = vand.u32 4294901760, %v438_v14  ;;  %v6461_v19 = vand.u32 4294901760, %v448_v15  ;;  %5779 = vmatpush3.msra.mxu0 %v400_v13  ;;  %v1004_v31 = vand.u32 4294901760, %v1003_v30 }
  0x20   : > { %v487_v22 = vsub.f32 %v485_v16, %v486_v20  ;;  %5790 = vmatprep.subr.mxu0 %v485_v16  ;;  %v494_v23 = vsub.f32 %v492_v17, %v493_v21  ;;  %p6267_p3 = pnand %p6266_p2, %p6260_p13 }
  0x21   : > { %5780 = vmatprep.mubr.f32.mxu0 %v6459_v18 }
  0x22   : > { %5781 = vmatmul.mubr.f32.vlgmr.msra.gmra.mxu0 %v6461_v19  ;;  %v488_v24 = vand.u32 4294901760, %v487_v22  ;;  %v495_v25 = vand.u32 4294901760, %v494_v23 }
  0x23   : > { %5791 = vmatpush3.msra.mxu0 %v485_v16  ;;  %5794 = vmatprep.mubr.f32.mxu0 %v6440_v6 }
  0x24   : > { %5792 = vmatprep.subr.mxu0 %v492_v17  ;;  %5783 = vmatprep.subr.mxu1 %v488_v24 }
  0x25   : > { %5793 = vmatpush3.msra.mxu0 %v492_v17  ;;  %5784 = vmatpush3.msra.mxu1 %v488_v24  ;;  %v5538_v24 = vld [vmem:[%s7016_s3] ss:$0 sm:$0xff] }
  0x26   : > { %5795 = vmatmul.mubr.f32.vlgmr.msra.gmra.mxu0 %v6443_v7  ;;  %5804 = vmatprep.subr.mxu0 %v486_v20 }
  0x27   : > { %5785 = vmatprep.subr.mxu1 %v495_v25  ;;  %5805 = vmatpush3.msra.mxu0 %v486_v20 }
  0x28   : > { %5786 = vmatpush3.msra.mxu1 %v495_v25  ;;  %5806 = vmatprep.subr.mxu0 %v493_v21 }
  0x29   : > { %5788 = vmatmul.mubr.f32.vlgmr.msra.gmra.mxu1 %v6437_v5  ;;  %5797 = vmatprep.subr.mxu1 %v397_v12 }
  0x2a   : > { %5798 = vmatpush3.msra.mxu1 %v397_v12  ;;  %5801 = vmatprep.mubr.f32.mxu1 %v6450_v10 }
  0x2b   : > { %5799 = vmatprep.subr.mxu1 %v400_v13  ;;  %5807 = vmatpush3.msra.mxu0 %v493_v21 }
  0x2c   : > { %5800 = vmatpush3.msra.mxu1 %v400_v13  ;;  %5808 = vmatprep.mubr.f32.mxu0 %v6435_v4 }
  0x2d   : > { %5802 = vmatmul.mubr.f32.vlgmr.msra.gmra.mxu1 %v6453_v11  ;;  %5809 = vmatmul.mubr.f32.vlgmr.msra.gmra.mxu0 %v6437_v5 }
  0x2e   : > { %5811 = vmatprep.subr.mxu1 %v397_v12  ;;  %5815 = vmatprep.mubr.f32.mxu1 %v6435_v4 }
  0x2f   : > { %5812 = vmatpush3.msra.mxu1 %v397_v12  ;;  %5818 = vmatprep.subr.mxu0 %v914_v27  ;;  %v6488_v12 = vand.u32 4294901760, %v1374_v8 }
  0x30   : > { %5813 = vmatprep.subr.mxu1 %v400_v13  ;;  %5819 = vmatpush3.msra.mxu0 %v914_v27 }
  0x31   : > { %5814 = vmatpush3.msra.mxu1 %v400_v13  ;;  %5828 = vmatprep.subr.mxu0 %v1001_v28  ;;  %v6493_v13 = vand.u32 4294901760, %v6486_v9  ;;  %v6496_v14 = vsub.f32 %v1374_v8, %v6488_v12 }
  0x32   : > { %5816 = vmatmul.mubr.f32.vlgmr.msra.gmra.mxu1 %v6437_v5  ;;  %5823 = vmatprep.subr.mxu1 %v1004_v31 }
  0x33   : > { %5824 = vmatpush3.msra.mxu1 %v1004_v31  ;;  %v1501_v15 = vsub.f32 %v6486_v9, %v6493_v13  ;;  %v6503_v16 = vand.u32 4294901760, %v6496_v14 }
  0x34   : > { %5833 = vmatprep.subr.mxu1 %v914_v27 }
  0x35   : > { %v1502_v17 = vand.u32 4294901760, %v1501_v15  ;;  %v1508_v20 = vsub.f32 %v6496_v14, %v6503_v16 }
  0x37   : > { %v1509_v21 = vand.u32 4294901760, %v1508_v20 }
  0xe2   : > { %v5782_v32 = vpop.f32.mrf.mxu0 }
  0xe4   : > { %v441_v33 = vpop.f32.mrf.mxu0 }
  0xe6   : > { %v5796_v34 = vpop.f32.mrf.mxu0 }
  0xe8   : > { %v614_v36 = vpop.f32.mrf.mxu0 }
  0xe9   : > { %v5789_v35 = vpop.f32.mrf.mxu1 }
  0xea   : > { %v539_v37 = vadd.f32 %v5789_v35, %v5782_v32 }
  0xeb   : > { %v532_v38 = vpop.f32.mrf.mxu1 }
  0xec   : > { %v622_v39 = vadd.f32 %v5796_v34, %v539_v37  ;;  %v533_v40 = vadd.f32 %v532_v38, %v441_v33 }
  0xed   : > { %v5803_v41 = vpop.f32.mrf.mxu1  ;;  %v5810_v42 = vpop.f32.mrf.mxu0 }
  0xee   : > { %v615_v43 = vadd.f32 %v614_v36, %v533_v40  ;;  %v705_v44 = vadd.f32 %v5803_v41, %v622_v39 }
  0xef   : > { %v696_v45 = vpop.f32.mrf.mxu1  ;;  %v781_v48 = vpop.f32.mrf.mxu0 }
  0xf0   : > { %v788_v46 = vadd.f32 %v5810_v42, %v705_v44  ;;  %v697_v47 = vadd.f32 %v696_v45, %v615_v43 }
  0xf2   : > { %v782_v49 = vadd.f32 %v781_v48, %v697_v47  ;;  %v5817_v50 = vpop.f32.mrf.mxu1 }
  0xf3   : > { %v867_v51 = vadd.f32 %v5817_v50, %v788_v46  ;;  %v5543_v46 = vld [vmem:[%s7018_s5] ss:$0 sm:$0xff] }
  0xf4   : > { %v860_v52 = vpop.f32.mrf.mxu1 }
  0xf5   : > { %v881_v53 = vsel %vm876_vm1, %v867_v51, 0  ;;  %v861_v54 = vadd.f32 %v860_v52, %v782_v49 }
  0xf6   : > { %v959_v55 = vand.u32 4294901760, %v881_v53 }
  0xf7   : > { %v878_v56 = vsel %vm876_vm1, %v861_v54, 0 }
  0xf8   : > { %v960_v57 = vsub.f32 %v881_v53, %v959_v55  ;;  %v949_v58 = vand.u32 4294901760, %v878_v56 }
  0xfa   : > { %v950_v59 = vsub.f32 %v878_v56, %v949_v58  ;;  %5825 = vmatprep.mubr.f32.mxu1 %v949_v58  ;;  %v961_v60 = vand.u32 4294901760, %v960_v57 }
  0xfb   : > { %5826 = vmatmul.mubr.f32.vlgmr.msra.gmra.mxu1 %v959_v55 }
  0xfc   : > { %5834 = vmatpush3.msra.mxu1 %v914_v27  ;;  %v951_v61 = vand.u32 4294901760, %v950_v59  ;;  %v962_v62 = vsub.f32 %v960_v57, %v961_v60 }
  0xfd   : > { %5843 = vmatprep.subr.mxu1 %v914_v27 }
  0xfe   : > { %5835 = vmatprep.mubr.f32.mxu1 %v951_v61  ;;  %v952_v63 = vsub.f32 %v950_v59, %v951_v61  ;;  %v963_v1 = vand.u32 4294901760, %v962_v62 }
  0xff   : > { %5836 = vmatmul.mubr.f32.vlgmr.msra.gmra.mxu1 %v961_v60 }
 0x100   : > { %5845 = vmatprep.mubr.f32.mxu1 %v949_v58  ;;  %v953_v0 = vand.u32 4294901760, %v952_v63  ;;  %5844 = vmatpush3.msra.mxu1 %v914_v27 }
 0x101   : > { %5855 = vmatprep.subr.mxu1 %v1502_v17 }
 0x102   : > { %5820 = vmatprep.mubr.f32.mxu0 %v953_v0 }
 0x103   : > { %5821 = vmatmul.mubr.f32.vlgmr.msra.gmra.mxu0 %v963_v1  ;;  %5846 = vmatmul.mubr.f32.vlgmr.msra.gmra.mxu1 %v959_v55 }
 0x104   : > { %5829 = vmatpush3.msra.mxu0 %v1001_v28  ;;  %5830 = vmatprep.mubr.f32.mxu0 %v950_v59 }
 0x105   : > { %5838 = vmatprep.subr.mxu0 %v1002_v29  ;;  %5856 = vmatpush3.msra.mxu1 %v1502_v17 }
 0x106   : > { %5857 = vmatprep.subr.mxu1 %v1509_v21 }
 0x107   : > { %5831 = vmatmul.mubr.f32.vlgmr.msra.gmra.mxu0 %v960_v57  ;;  %5858 = vmatpush3.msra.mxu1 %v1509_v21 }
 0x108   : > { %5839 = vmatpush3.msra.mxu0 %v1002_v29  ;;  %5840 = vmatprep.mubr.f32.mxu0 %v949_v58 }
 0x109   : > { %5848 = vmatprep.subr.mxu0 %v6480_v3  ;;  %5869 = vmatprep.subr.mxu1 %v6480_v3 }
 0x10b   : > { %5841 = vmatmul.mubr.f32.vlgmr.msra.gmra.mxu0 %v959_v55 }
 0x10c   : > { %5849 = vmatpush3.msra.mxu0 %v6480_v3 }
 0x10d   : > { %5850 = vmatprep.subr.mxu0 %v6488_v12 }
 0x10e   : > { %5851 = vmatpush3.msra.mxu0 %v6488_v12 }
 0x10f   : > { %5862 = vmatprep.subr.mxu0 %v6486_v9 }
 0x1bb   : > { %v5827_v22 = vpop.f32.mrf.mxu1 }
 0x1bd   : > { %v1041_v23 = vpop.f32.mrf.mxu1 }
 0x1bf   : > { %v5837_v25 = vpop.f32.mrf.mxu1 }
 0x1c1   : > { %v1202_v31 = vpop.f32.mrf.mxu1 }
 0x1c3   : > { %v5822_v26 = vpop.f32.mrf.mxu0  ;;  %v5847_v38 = vpop.f32.mrf.mxu1 }
 0x1c4   : > { %v966_v27 = vadd.f32 %v5822_v26, %v5538_v24 }
 0x1c5   : > { %v955_v28 = vpop.f32.mrf.mxu0  ;;  %v1362_v45 = vpop.f32.mrf.mxu1 }
 0x1c6   : > { %v956_v29 = vadd.f32 %v5538_v24, %v955_v28  ;;  %v1048_v30 = vadd.f32 %v5827_v22, %v966_v27 }
 0x1c7   : > { %v5832_v32 = vpop.f32.mrf.mxu0 }
 0x1c8   : > { %v1129_v33 = vadd.f32 %v5832_v32, %v1048_v30  ;;  %v1042_v34 = vadd.f32 %v1041_v23, %v956_v29 }
 0x1c9   : > { %v1121_v35 = vpop.f32.mrf.mxu0 }
 0x1ca   : > { %v1122_v36 = vadd.f32 %v1121_v35, %v1042_v34  ;;  %v1211_v37 = vadd.f32 %v5837_v25, %v1129_v33 }
 0x1cb   : > { %v5842_v39 = vpop.f32.mrf.mxu0 }
 0x1cc   : > { %v1291_v40 = vadd.f32 %v5842_v39, %v1211_v37  ;;  %v1203_v41 = vadd.f32 %v1202_v31, %v1122_v36 }
 0x1cd   : > { %v1284_v42 = vpop.f32.mrf.mxu0 }
 0x1ce   : > { %v1369_v43 = vadd.f32 %v5847_v38, %v1291_v40  ;;  %v1285_v44 = vadd.f32 %v1284_v42, %v1203_v41  ;;  %v5541_v42 = vld [vmem:[%s7017_s4 + $0x18] sm:$0xff] }
 0x1d0   : > { %v6515_v47 = vmax.f32 %v1369_v43, 0.0  ;;  %v1363_v48 = vadd.f32 %v1362_v45, %v1285_v44  ;;  %v6556_v43 = vand.u32 4294901760, %v5541_v42  ;;  %v5540_v44 = vld [vmem:[%s7017_s4 + $0x10] sm:$0xff] }
 0x1d2   : > { %v1380_v49 = vsel %vm361_vm0, %v6515_v47, 0  ;;  %v6519_v50 = vmax.f32 %v1363_v48, 0.0  ;;  %v3419_v51 = vmul.f32 %v5543_v46, %v6515_v47  ;;  %v6562_v45 = vsub.f32 %v5541_v42, %v6556_v43 }
 0x1d3   : > { %v1459_v52 = vand.u32 4294901760, %v1380_v49 }
 0x1d4   : > { %v1377_v53 = vsel %vm361_vm0, %v6519_v50, 0  ;;  %v3423_v54 = vsel %vm361_vm0, %v3419_v51, 0.0  ;;  %v3418_v55 = vmul.f32 %v5543_v46, %v6519_v50  ;;  %v6564_v46 = vand.u32 4294901760, %v5540_v44 }
 0x1d5   : > { %3424 = vadd.xlane.f32.xlu1 %v3423_v54  ;;  %v1449_v56 = vand.u32 4294901760, %v1377_v53  ;;  %v1460_v57 = vsub.f32 %v1380_v49, %v1459_v52  ;;  %v6569_v48 = vand.u32 4294901760, %v6562_v45 }
 0x1d6   : > { %v3420_v58 = vsel %vm361_vm0, %v3418_v55, 0.0  ;;  %v6572_v49 = vsub.f32 %v5540_v44, %v6564_v46 }
 0x1d7   : > { %3421 = vadd.xlane.f32.xlu0 %v3420_v58  ;;  %5859 = vmatprep.mubr.f32.mxu1 %v1449_v56  ;;  %v1450_v59 = vsub.f32 %v1377_v53, %v1449_v56  ;;  %v1461_v60 = vand.u32 4294901760, %v1460_v57  ;;  %v2521_v51 = vsub.f32 %v6562_v45, %v6569_v48 }
 0x1d8   : > { %5860 = vmatmul.mubr.f32.vlgmr.msra.gmra.mxu1 %v1459_v52 }
 0x1d9   : > { %5870 = vmatpush3.msra.mxu1 %v6480_v3  ;;  %v1451_v61 = vand.u32 4294901760, %v1450_v59  ;;  %v1462_v62 = vsub.f32 %v1460_v57, %v1461_v60  ;;  %v2522_v53 = vand.u32 4294901760, %v2521_v51 }
 0x1da   : > { %5871 = vmatprep.subr.mxu1 %v6488_v12 }
 0x1db   : > { %5872 = vmatpush3.msra.mxu1 %v6488_v12  ;;  %5873 = vmatprep.mubr.f32.mxu1 %v1451_v61  ;;  %v1452_v63 = vsub.f32 %v1450_v59, %v1451_v61  ;;  %v1463_v1 = vand.u32 4294901760, %v1462_v62 }
 0x1dc   : > { %5874 = vmatmul.mubr.f32.vlgmr.msra.gmra.mxu1 %v1461_v60  ;;  %5883 = vmatprep.subr.mxu1 %v6480_v3 }
 0x1dd   : > { %5884 = vmatpush3.msra.mxu1 %v6480_v3  ;;  %5887 = vmatprep.mubr.f32.mxu1 %v1449_v56  ;;  %v1453_v0 = vand.u32 4294901760, %v1452_v63 }
 0x1de   : > { %5885 = vmatprep.subr.mxu1 %v6488_v12 }
 0x1df   : > { %5852 = vmatprep.mubr.f32.mxu0 %v1453_v0  ;;  %5886 = vmatpush3.msra.mxu1 %v6488_v12 }
 0x1e0   : > { %5853 = vmatmul.mubr.f32.vlgmr.msra.gmra.mxu0 %v1463_v1  ;;  %5888 = vmatmul.mubr.f32.vlgmr.msra.gmra.mxu1 %v1459_v52 }
 0x1e1   : > { %5863 = vmatpush3.msra.mxu0 %v6486_v9  ;;  %5866 = vmatprep.mubr.f32.mxu0 %v1450_v59 }
 0x1e2   : > { %5864 = vmatprep.subr.mxu0 %v6496_v14  ;;  %5901 = vmatprep.mubr.f32.mxu1 %v6435_v4 }
 0x1e3   : > { %5865 = vmatpush3.msra.mxu0 %v6496_v14 }
 0x1e4   : > { %5867 = vmatmul.mubr.f32.vlgmr.msra.gmra.mxu0 %v1460_v57  ;;  %5876 = vmatprep.subr.mxu0 %v6493_v13  ;;  %v5539_v57 = vld [vmem:[%s7016_s3 + $0x1] ss:$0 sm:$0xff] }
 0x1e5   : > { %5877 = vmatpush3.msra.mxu0 %v6493_v13  ;;  %5880 = vmatprep.mubr.f32.mxu0 %v1449_v56 }
 0x1e6   : > { %5878 = vmatprep.subr.mxu0 %v6503_v16 }
 0x1e7   : > { %5879 = vmatpush3.msra.mxu0 %v6503_v16 }
 0x1e8   : > { %5881 = vmatmul.mubr.f32.vlgmr.msra.gmra.mxu0 %v1459_v52  ;;  %v6579_v52 = vand.u32 4294901760, %v6572_v49 }
 0x1e9   : > { %5894 = vmatprep.mubr.f32.mxu0 %v6459_v18 }
 0x1ea   : > { %v2528_v54 = vsub.f32 %v6572_v49, %v6579_v52 }
 0x1ec   : > { %v2529_v55 = vand.u32 4294901760, %v2528_v54 }
 0x298   : > { %v5861_v2 = vpop.f32.mrf.mxu1 }
 0x29a   : > { %v1546_v3 = vpop.f32.mrf.mxu1 }
 0x29c   : > { %v5875_v8 = vpop.f32.mrf.mxu1 }
 0x29e   : > { %v1710_v14 = vpop.f32.mrf.mxu1 }
 0x2a0   : > { %v5854_v9 = vpop.f32.mrf.mxu0  ;;  %v5889_v24 = vpop.f32.mrf.mxu1 }
 0x2a1   : > { %v1553_v15 = vadd.f32 %v5861_v2, %v5854_v9 }
 0x2a2   : > { %v1455_v12 = vpop.f32.mrf.mxu0  ;;  %v1874_v30 = vpop.f32.mrf.mxu1 }
 0x2a3   : > { %v1547_v20 = vadd.f32 %v1546_v3, %v1455_v12 }
 0x2a4   : > { %v5868_v17 = vpop.f32.mrf.mxu0 }
 0x2a5   : > { %v1636_v21 = vadd.f32 %v5868_v17, %v1553_v15 }
 0x2a6   : > { %v1628_v22 = vpop.f32.mrf.mxu0 }
 0x2a7   : > { %v1629_v13 = vadd.f32 %v1628_v22, %v1547_v20  ;;  %v1719_v23 = vadd.f32 %v5875_v8, %v1636_v21 }
 0x2a8   : > { %v5882_v25 = vpop.f32.mrf.mxu0 }
 0x2a9   : > { %v1802_v26 = vadd.f32 %v5882_v25, %v1719_v23  ;;  %v1711_v16 = vadd.f32 %v1710_v14, %v1629_v13  ;;  %v5544_v25 = vld [vmem:[%s7018_s5 + $0x1] ss:$0 sm:$0xff] }
 0x2aa   : > { %v1795_v27 = vpop.f32.mrf.mxu0 }
 0x2ab   : > { %v1881_v28 = vadd.f32 %v5889_v24, %v1802_v26  ;;  %v1796_v29 = vadd.f32 %v1795_v27, %v1711_v16 }
 0x2ad   : > { %v1918_v31 = vand.u32 4294901760, %v1881_v28  ;;  %v1875_v32 = vadd.f32 %v1874_v30, %v1796_v29 }
 0x2af   : > { %v2006_v33 = vsub.f32 %v1881_v28, %v1918_v31  ;;  %v1921_v34 = vand.u32 4294901760, %v1875_v32  ;;  %5890 = vmatprep.subr.mxu0 %v1918_v31 }
 0x2b0   : > { %5891 = vmatpush3.msra.mxu0 %v1918_v31 }
 0x2b1   : > { %v2013_v35 = vsub.f32 %v1875_v32, %v1921_v34  ;;  %5892 = vmatprep.subr.mxu0 %v1921_v34  ;;  %v2007_v36 = vand.u32 4294901760, %v2006_v33 }
 0x2b2   : > { %5893 = vmatpush3.msra.mxu0 %v1921_v34 }
 0x2b3   : > { %5904 = vmatprep.subr.mxu0 %v2006_v33  ;;  %5895 = vmatmul.mubr.f32.vlgmr.msra.gmra.mxu0 %v6461_v19  ;;  %v2008_v37 = vsub.f32 %v2006_v33, %v2007_v36  ;;  %v2014_v38 = vand.u32 4294901760, %v2013_v35 }
 0x2b4   : > { %5905 = vmatpush3.msra.mxu0 %v2006_v33  ;;  %5908 = vmatprep.mubr.f32.mxu0 %v6440_v6 }
 0x2b5   : > { %5906 = vmatprep.subr.mxu0 %v2013_v35  ;;  %v2009_v39 = vand.u32 4294901760, %v2008_v37  ;;  %v2015_v40 = vsub.f32 %v2013_v35, %v2014_v38 }
 0x2b6   : > { %5907 = vmatpush3.msra.mxu0 %v2013_v35 }
 0x2b7   : > { %5897 = vmatprep.subr.mxu1 %v2009_v39  ;;  %5918 = vmatprep.subr.mxu0 %v2007_v36  ;;  %v2016_v41 = vand.u32 4294901760, %v2015_v40 }
 0x2b8   : > { %5898 = vmatpush3.msra.mxu1 %v2009_v39  ;;  %5909 = vmatmul.mubr.f32.vlgmr.msra.gmra.mxu0 %v6443_v7 }
 0x2b9   : > { %5919 = vmatpush3.msra.mxu0 %v2007_v36  ;;  %5899 = vmatprep.subr.mxu1 %v2016_v41 }
 0x2ba   : > { %5920 = vmatprep.subr.mxu0 %v2014_v38  ;;  %5900 = vmatpush3.msra.mxu1 %v2016_v41 }
 0x2bb   : > { %5921 = vmatpush3.msra.mxu0 %v2014_v38  ;;  %5902 = vmatmul.mubr.f32.vlgmr.msra.gmra.mxu1 %v6437_v5 }
 0x2bc   : > { %5911 = vmatprep.subr.mxu1 %v1918_v31  ;;  %5915 = vmatprep.mubr.f32.mxu1 %v6450_v10 }
 0x2bd   : > { %5912 = vmatpush3.msra.mxu1 %v1918_v31  ;;  %5922 = vmatprep.mubr.f32.mxu0 %v6435_v4 }
 0x2be   : > { %5913 = vmatprep.subr.mxu1 %v1921_v34  ;;  %5923 = vmatmul.mubr.f32.vlgmr.msra.gmra.mxu0 %v6437_v5 }
 0x2bf   : > { %5914 = vmatpush3.msra.mxu1 %v1921_v34  ;;  %5932 = vmatprep.subr.mxu0 %v6556_v43 }
 0x2c0   : > { %5916 = vmatmul.mubr.f32.vlgmr.msra.gmra.mxu1 %v6453_v11  ;;  %5925 = vmatprep.subr.mxu1 %v1918_v31 }
 0x2c1   : > { %5926 = vmatpush3.msra.mxu1 %v1918_v31  ;;  %5929 = vmatprep.mubr.f32.mxu1 %v6435_v4 }
 0x2c2   : > { %5927 = vmatprep.subr.mxu1 %v1921_v34  ;;  %5933 = vmatpush3.msra.mxu0 %v6556_v43 }
 0x2c3   : > { %5928 = vmatpush3.msra.mxu1 %v1921_v34  ;;  %5934 = vmatprep.subr.mxu0 %v6564_v46 }
 0x2c4   : > { %5930 = vmatmul.mubr.f32.vlgmr.msra.gmra.mxu1 %v6437_v5  ;;  %5935 = vmatpush3.msra.mxu0 %v6564_v46 }
 0x2c5   : > { %5946 = vmatprep.subr.mxu0 %v6562_v45  ;;  %5939 = vmatprep.subr.mxu1 %v2522_v53 }
 0x2c6   : > { %5940 = vmatpush3.msra.mxu1 %v2522_v53 }
 0x2c7   : > { %5941 = vmatprep.subr.mxu1 %v2529_v55 }
 0x2c8   : > { %5942 = vmatpush3.msra.mxu1 %v2529_v55 }
 0x2c9   : > { %5953 = vmatprep.subr.mxu1 %v6556_v43 }
 0x373   : > { %v5896_v56 = vpop.f32.mrf.mxu0 }
 0x374   : > { %v1973_v59 = vadd.f32 %v5896_v56, %v5539_v57 }
 0x375   : > { %v1962_v58 = vpop.f32.mrf.mxu0 }
 0x376   : > { %v1963_v62 = vadd.f32 %v5539_v57, %v1962_v58 }
 0x378   : > { %v5910_v60 = vpop.f32.mrf.mxu0 }
 0x37a   : > { %v2135_v0 = vpop.f32.mrf.mxu0 }
 0x37b   : > { %v5903_v61 = vpop.f32.mrf.mxu1 }
 0x37c   : > { %v2060_v63 = vadd.f32 %v5903_v61, %v1973_v59 }
 0x37d   : > { %v2053_v1 = vpop.f32.mrf.mxu1 }
 0x37e   : > { %v2143_v2 = vadd.f32 %v5910_v60, %v2060_v63  ;;  %v2054_v3 = vadd.f32 %v2053_v1, %v1963_v62  ;;  %v5924_v12 = vpop.f32.mrf.mxu0 }
 0x380   : > { %v2136_v8 = vadd.f32 %v2135_v0, %v2054_v3  ;;  %v5917_v9 = vpop.f32.mrf.mxu1  ;;  %v2302_v21 = vpop.f32.mrf.mxu0 }
 0x381   : > { %v2226_v15 = vadd.f32 %v5917_v9, %v2143_v2 }
 0x382   : > { %v2217_v14 = vpop.f32.mrf.mxu1 }
 0x383   : > { %v2309_v17 = vadd.f32 %v5924_v12, %v2226_v15  ;;  %v2218_v20 = vadd.f32 %v2217_v14, %v2136_v8 }
 0x384   : > { %v5931_v22 = vpop.f32.mrf.mxu1 }
 0x385   : > { %v2303_v13 = vadd.f32 %v2302_v21, %v2218_v20  ;;  %v2388_v23 = vadd.f32 %v5931_v22, %v2309_v17 }
 0x386   : > { %v2381_v24 = vpop.f32.mrf.mxu1 }
 0x387   : > { %v6591_v26 = vmax.f32 %v2388_v23, 0.0  ;;  %v2382_v16 = vadd.f32 %v2381_v24, %v2303_v13 }
 0x389   : > { %v2400_v27 = vsel %vm361_vm0, %v6591_v26, 0  ;;  %v6595_v28 = vmax.f32 %v2382_v16, 0.0  ;;  %v3434_v29 = vmul.f32 %v5544_v25, %v6591_v26 }
 0x38a   : > { %v2479_v30 = vand.u32 4294901760, %v2400_v27 }
 0x38b   : > { %v2397_v31 = vsel %vm361_vm0, %v6595_v28, 0  ;;  %v3438_v32 = vsel %vm361_vm0, %v3434_v29, 0.0  ;;  %v3433_v33 = vmul.f32 %v5544_v25, %v6595_v28 }
 0x38c   : > { %v2480_v34 = vsub.f32 %v2400_v27, %v2479_v30  ;;  %v2469_v35 = vand.u32 4294901760, %v2397_v31  ;;  %3439 = vadd.xlane.f32.xlu1 %v3438_v32 }
 0x38d   : > { %v3435_v36 = vsel %vm361_vm0, %v3433_v33, 0.0 }
 0x38e   : > { %v2470_v37 = vsub.f32 %v2397_v31, %v2469_v35  ;;  %3436 = vadd.xlane.f32.xlu0 %v3435_v36  ;;  %5943 = vmatprep.mubr.f32.mxu1 %v2469_v35  ;;  %v2481_v38 = vand.u32 4294901760, %v2480_v34 }
 0x38f   : > { %5944 = vmatmul.mubr.f32.vlgmr.msra.gmra.mxu1 %v2479_v30 }
 0x390   : > { %5954 = vmatpush3.msra.mxu1 %v6556_v43  ;;  %v2471_v39 = vand.u32 4294901760, %v2470_v37  ;;  %v2482_v40 = vsub.f32 %v2480_v34, %v2481_v38 }
 0x391   : > { %5955 = vmatprep.subr.mxu1 %v6564_v46 }
 0x392   : > { %5956 = vmatpush3.msra.mxu1 %v6564_v46  ;;  %5957 = vmatprep.mubr.f32.mxu1 %v2471_v39  ;;  %v2472_v41 = vsub.f32 %v2470_v37, %v2471_v39  ;;  %v2483_v44 = vand.u32 4294901760, %v2482_v40  ;;  %v5545_v40 = vld [vmem:[%s7018_s5 + $0x2] ss:$0 sm:$0xff] }
 0x393   : > { %5958 = vmatmul.mubr.f32.vlgmr.msra.gmra.mxu1 %v2481_v38  ;;  %5967 = vmatprep.subr.mxu1 %v6556_v43 }
 0x394   : > { %5968 = vmatpush3.msra.mxu1 %v6556_v43  ;;  %5971 = vmatprep.mubr.f32.mxu1 %v2469_v35  ;;  %v2473_v42 = vand.u32 4294901760, %v2472_v41 }
 0x395   : > { %5969 = vmatprep.subr.mxu1 %v6564_v46 }
 0x396   : > { %5936 = vmatprep.mubr.f32.mxu0 %v2473_v42  ;;  %5970 = vmatpush3.msra.mxu1 %v6564_v46 }
 0x397   : > { %5937 = vmatmul.mubr.f32.vlgmr.msra.gmra.mxu0 %v2483_v44  ;;  %5972 = vmatmul.mubr.f32.vlgmr.msra.gmra.mxu1 %v2479_v30 }
 0x398   : > { %5947 = vmatpush3.msra.mxu0 %v6562_v45  ;;  %5950 = vmatprep.mubr.f32.mxu0 %v2470_v37 }
 0x399   : > { %5948 = vmatprep.subr.mxu0 %v6572_v49  ;;  %5985 = vmatprep.mubr.f32.mxu1 %v6435_v4 }
 0x39a   : > { %5949 = vmatpush3.msra.mxu0 %v6572_v49 }
 0x39b   : > { %5951 = vmatmul.mubr.f32.vlgmr.msra.gmra.mxu0 %v2480_v34  ;;  %5960 = vmatprep.subr.mxu0 %v6569_v48 }
 0x39c   : > { %5961 = vmatpush3.msra.mxu0 %v6569_v48  ;;  %5964 = vmatprep.mubr.f32.mxu0 %v2469_v35 }
 0x39d   : > { %5962 = vmatprep.subr.mxu0 %v6579_v52 }
 0x39e   : > { %5963 = vmatpush3.msra.mxu0 %v6579_v52 }
 0x39f   : > { %5965 = vmatmul.mubr.f32.vlgmr.msra.gmra.mxu0 %v2479_v30 }
 0x3a0   : > { %5978 = vmatprep.mubr.f32.mxu0 %v6459_v18 }
 0x44f   : > { %v5945_v43 = vpop.f32.mrf.mxu1 }
 0x451   : > { %v2566_v45 = vpop.f32.mrf.mxu1 }
 0x453   : > { %v5959_v46 = vpop.f32.mrf.mxu1 }
 0x455   : > { %v2730_v49 = vpop.f32.mrf.mxu1 }
 0x457   : > { %v5938_v51 = vpop.f32.mrf.mxu0  ;;  %v5973_v60 = vpop.f32.mrf.mxu1 }
 0x458   : > { %v2573_v54 = vadd.f32 %v5945_v43, %v5938_v51 }
 0x459   : > { %v2475_v53 = vpop.f32.mrf.mxu0  ;;  %v2894_v1 = vpop.f32.mrf.mxu1 }
 0x45a   : > { %v2567_v56 = vadd.f32 %v2566_v45, %v2475_v53  ;;  %v3422_v53 = vpop.xlane.xlu0 %3421 }
 0x45b   : > { %v5952_v55 = vpop.f32.mrf.mxu0 }
 0x45c   : > { %v2656_v57 = vadd.f32 %v5952_v55, %v2573_v54  ;;  %v3425_v54 = vpop.xlane.xlu1 %3424 }
 0x45d   : > { %v2648_v58 = vpop.f32.mrf.mxu0 }
 0x45e   : > { %v2649_v48 = vadd.f32 %v2648_v58, %v2567_v56  ;;  %v2739_v59 = vadd.f32 %v5959_v46, %v2656_v57 }
 0x45f   : > { %v5966_v61 = vpop.f32.mrf.mxu0 }
 0x460   : > { %v2822_v62 = vadd.f32 %v5966_v61, %v2739_v59  ;;  %v2731_v52 = vadd.f32 %v2730_v49, %v2649_v48  ;;  %v3437_v49 = vpop.xlane.xlu0 %3436  ;;  %v3440_v55 = vpop.xlane.xlu1 %3439 }
 0x461   : > { %v2815_v63 = vpop.f32.mrf.mxu0  ;;  %v3441_v56 = vadd.f32 %v3437_v49, %v3422_v53  ;;  %v3442_v59 = vadd.f32 %v3440_v55, %v3425_v54  ;;  %v5546_v54 = vld [vmem:[%s7019_s6 + $0x10] sm:$0xff] }
 0x462   : > { %v2901_v0 = vadd.f32 %v5973_v60, %v2822_v62  ;;  %v2816_v18 = vadd.f32 %v2815_v63, %v2731_v52  ;;  %v6319_v60 = vmov 0.0   ;;  %v3490_v62 = vlaneseq }
 0x464   : > { %v2938_v2 = vand.u32 4294901760, %v2901_v0  ;;  %v2895_v3 = vadd.f32 %v2894_v1, %v2816_v18  ;;  %v3491_v52 = vshrl.u32 %v3490_v62, 7  ;;  %v3494_v63 = vand.u32 127, %v3490_v62 }
 0x466   : > { %v3026_v8 = vsub.f32 %v2901_v0, %v2938_v2  ;;  %v2941_v9 = vand.u32 4294901760, %v2895_v3  ;;  %5974 = vmatprep.subr.mxu0 %v2938_v2  ;;  %vm3499_vm2 = vcmp.lt.s32.totalorder %v3494_v63, %v3491_v52  ;;  %v3492_v0 = vadd.s32 8, %v3491_v52 }
 0x467   : > { %5975 = vmatpush3.msra.mxu0 %v2938_v2 }
 0x468   : > { %v3033_v12 = vsub.f32 %v2895_v3, %v2941_v9  ;;  %5976 = vmatprep.subr.mxu0 %v2941_v9  ;;  %v3027_v15 = vand.u32 4294901760, %v3026_v8  ;;  %vm3500_vm6 = vcmp.lt.s32.totalorder %v3494_v63, %v3492_v0 }
 0x469   : > { %5977 = vmatpush3.msra.mxu0 %v2941_v9 }
 0x46a   : > { %5988 = vmatprep.subr.mxu0 %v3026_v8  ;;  %5979 = vmatmul.mubr.f32.vlgmr.msra.gmra.mxu0 %v6461_v19  ;;  %v3028_v14 = vsub.f32 %v3026_v8, %v3027_v15  ;;  %v3034_v17 = vand.u32 4294901760, %v3033_v12 }
 0x46b   : > { %5989 = vmatpush3.msra.mxu0 %v3026_v8  ;;  %5992 = vmatprep.mubr.f32.mxu0 %v6440_v6 }
 0x46c   : > { %5990 = vmatprep.subr.mxu0 %v3033_v12  ;;  %v3029_v20 = vand.u32 4294901760, %v3028_v14  ;;  %v3035_v21 = vsub.f32 %v3033_v12, %v3034_v17  ;;  %v3535_v14 = vld [vmem:[%s7019_s6] sm:$0xff] }
 0x46d   : > { %5991 = vmatpush3.msra.mxu0 %v3033_v12  ;;  %v3536_v12 = vld [vmem:[%s7019_s6 + $0x8] sm:$0xff] }
 0x46e   : > { %5981 = vmatprep.subr.mxu1 %v3029_v20  ;;  %6002 = vmatprep.subr.mxu0 %v3027_v15  ;;  %v3036_v22 = vand.u32 4294901760, %v3035_v21 }
 0x46f   : > { %5982 = vmatpush3.msra.mxu1 %v3029_v20  ;;  %5993 = vmatmul.mubr.f32.vlgmr.msra.gmra.mxu0 %v6443_v7  ;;  %v5542_v7 = vld [vmem:[%s7016_s3 + $0x2] ss:$0 sm:$0xff] }
 0x470   : > { %6003 = vmatpush3.msra.mxu0 %v3027_v15  ;;  %5983 = vmatprep.subr.mxu1 %v3036_v22  ;;  %v6656_v15 = vand.u32 4294901760, %v3536_v12 }
 0x471   : > { %6004 = vmatprep.subr.mxu0 %v3034_v17  ;;  %5984 = vmatpush3.msra.mxu1 %v3036_v22 }
 0x472   : > { %6005 = vmatpush3.msra.mxu0 %v3034_v17  ;;  %5986 = vmatmul.mubr.f32.vlgmr.msra.gmra.mxu1 %v6437_v5  ;;  %v6661_v17 = vand.u32 4294901760, %v3535_v14  ;;  %v6668_v20 = vsub.f32 %v3536_v12, %v6656_v15 }
 0x473   : > { %5995 = vmatprep.subr.mxu1 %v2938_v2  ;;  %5999 = vmatprep.mubr.f32.mxu1 %v6450_v10 }
 0x474   : > { %5996 = vmatpush3.msra.mxu1 %v2938_v2  ;;  %6006 = vmatprep.mubr.f32.mxu0 %v6435_v4  ;;  %v6672_v21 = vsub.f32 %v3535_v14, %v6661_v17  ;;  %v3648_v22 = vand.u32 4294901760, %v6668_v20 }
 0x475   : > { %5997 = vmatprep.subr.mxu1 %v2941_v9  ;;  %6007 = vmatmul.mubr.f32.vlgmr.msra.gmra.mxu0 %v6437_v5 }
 0x476   : > { %5998 = vmatpush3.msra.mxu1 %v2941_v9  ;;  %6016 = vmatprep.subr.mxu0 %v6319_v60 }
 0x477   : > { %6000 = vmatmul.mubr.f32.vlgmr.msra.gmra.mxu1 %v6453_v11  ;;  %6009 = vmatprep.subr.mxu1 %v2938_v2 }
 0x478   : > { %6010 = vmatpush3.msra.mxu1 %v2938_v2  ;;  %6013 = vmatprep.mubr.f32.mxu1 %v6435_v4 }
 0x479   : > { %6011 = vmatprep.subr.mxu1 %v2941_v9  ;;  %6020 = vmatprep.mubr.msk.f32.mxu0 %vm6320_vm12, %v6319_v60 }
 0x47a   : > { %6012 = vmatpush3.msra.mxu1 %v2941_v9  ;;  %6017 = vmatpush3.msra.mxu0 %v6656_v15 }
 0x47b   : > { %6014 = vmatmul.mubr.f32.vlgmr.msra.gmra.mxu1 %v6437_v5  ;;  %6023 = vmatprep.subr.mxu1 %v6319_v60 }
 0x47c   : > { %6027 = vmatprep.mubr.msk.f32.mxu1 %vm6320_vm12, %v6319_v60  ;;  %6018 = vmatprep.subr.mxu0 %v6319_v60 }
 0x47d   : > { %6019 = vmatpush3.msra.mxu0 %v6661_v17 }
 0x47e   : > { %6030 = vmatprep.subr.mxu0 %v6319_v60 }
 0x52a   : > { %v5980_v6 = vpop.f32.mrf.mxu0 }
 0x52b   : > { %v2993_v19 = vadd.f32 %v5980_v6, %v5542_v7  ;;  %v3655_v6 = vand.u32 4294901760, %v6672_v21 }
 0x52c   : > { %v2982_v10 = vpop.f32.mrf.mxu0 }
 0x52d   : > { %v2983_v24 = vadd.f32 %v5542_v7, %v2982_v10  ;;  %v3649_v7 = vsub.f32 %v6668_v20, %v3648_v22  ;;  %v3656_v10 = vsub.f32 %v6672_v21, %v3655_v6 }
 0x52f   : > { %v5994_v13 = vpop.f32.mrf.mxu0 }
 0x531   : > { %v3155_v11 = vpop.f32.mrf.mxu0 }
 0x532   : > { %v5987_v23 = vpop.f32.mrf.mxu1 }
 0x533   : > { %v3080_v25 = vadd.f32 %v5987_v23, %v2993_v19  ;;  %v3650_v19 = vand.u32 4294901760, %v3649_v7 }
 0x534   : > { %v3073_v16 = vpop.f32.mrf.mxu1 }
 0x535   : > { %v3163_v27 = vadd.f32 %v5994_v13, %v3080_v25  ;;  %v3074_v29 = vadd.f32 %v3073_v16, %v2983_v24  ;;  %v6008_v31 = vpop.f32.mrf.mxu0  ;;  %v3657_v13 = vand.u32 4294901760, %v3656_v10  ;;  %6024 = vmatpush3.msra.mxu1 %v3650_v19  ;;  %v5549_v19 = vld [vmem:[%s7019_s6 + $0x28] sm:$0xff] }
 0x536   : > { %6025 = vmatprep.subr.mxu1 %v6319_v60 }
 0x537   : > { %v3156_v4 = vadd.f32 %v3155_v11, %v3074_v29  ;;  %v6001_v30 = vpop.f32.mrf.mxu1  ;;  %v3322_v35 = vpop.f32.mrf.mxu0  ;;  %6026 = vmatpush3.msra.mxu1 %v3657_v13 }
 0x538   : > { %v3246_v32 = vadd.f32 %v6001_v30, %v3163_v27  ;;  %6037 = vmatprep.subr.mxu1 %v6319_v60 }
 0x539   : > { %v3237_v5 = vpop.f32.mrf.mxu1 }
 0x53a   : > { %v3329_v33 = vadd.f32 %v6008_v31, %v3246_v32  ;;  %v3238_v34 = vadd.f32 %v3237_v5, %v3156_v4 }
 0x53b   : > { %v6015_v36 = vpop.f32.mrf.mxu1 }
 0x53c   : > { %v3323_v37 = vadd.f32 %v3322_v35, %v3238_v34  ;;  %v6632_v38 = vadd.f32 %v6015_v36, %v3329_v33 }
 0x53d   : > { %v3401_v39 = vpop.f32.mrf.mxu1 }
 0x53e   : > { %v3412_v41 = vmax.f32 %v6632_v38, 0.0  ;;  %v6638_v42 = vadd.f32 %v3401_v39, %v3323_v37  ;;  %v6710_v38 = vand.u32 4294901760, %v5546_v54 }
 0x540   : > { %v3411_v44 = vmax.f32 %v6638_v42, 0.0  ;;  %v3449_v43 = vmul.f32 %v5545_v40, %v3412_v41 }
 0x542   : > { %v3453_v45 = vsel %vm361_vm0, %v3449_v43, 0.0  ;;  %v3448_v46 = vmul.f32 %v5545_v40, %v3411_v44 }
 0x543   : > { %3454 = vadd.xlane.f32.xlu1 %v3453_v45 }
 0x544   : > { %v3450_v51 = vsel %vm361_vm0, %v3448_v46, 0.0 }
 0x545   : > { %3451 = vadd.xlane.f32.xlu0 %v3450_v51 }
 0x5cc   : > { %v3455_v48 = vpop.xlane.xlu1 %3454 }
 0x5cd   : > { %v3457_v61 = vadd.f32 %v3455_v48, %v3442_v59 }
 0x5ce   : > { %v3452_v57 = vpop.xlane.xlu0 %3451 }
 0x5cf   : > { %v3456_v58 = vadd.f32 %v3452_v57, %v3441_v56 }
 0x5d1   : > { %3458 = vxpose.xlu0.b32.start [1/2] (short) (narrow) %v3456_v58, 16  ;;  %6249 = vtanh.f32 %v3456_v58 }
 0x5d2   : > { %6251 = vtanh.f32 %v3457_v61 }
 0x5d5   : > { %3459 = vxpose.xlu0.b32.end [2/2] (short) (narrow) %v3457_v61, 16 }
 0x5de   : > { %v6250_v24 = vpop.eup %6249 }
 0x5df   : > { %v6252_v29 = vpop.eup %6251 }
 0x64d   : > { %v3474_v18 = vpop.trf.xlu0 }
 0x64e   : > { %vm3495_vm3 = vcmp.gt.f32.partialorder %v3474_v18, %v3456_v58  ;;  %vm3497_vm4 = vcmp.eq.f32.partialorder %v3474_v18, %v3456_v58 }
 0x64f   : > { %vm3501_vm5 = vmand %vm3497_vm4, %vm3499_vm2 }
 0x650   : > { %vm3503_vm7 = vmor %vm3495_vm3, %vm3501_vm5 }
 0x651   : > { %v3475_v1 = vpop.trf.xlu0  ;;  %v3505_v2 = vsel %vm3503_vm7, 1.0, %v6319_v60 }
 0x652   : > { %vm3496_vm8 = vcmp.gt.f32.partialorder %v3475_v1, %v3457_v61  ;;  %vm3498_vm9 = vcmp.eq.f32.partialorder %v3475_v1, %v3457_v61  ;;  %v3507_v3 = vsel %vm361_vm0, %v3505_v2, 0.0  ;;  %v6717_v61 = vsub.f32 %v5546_v54, %v6710_v38 }
 0x653   : > { %vm3502_vm10 = vmand %vm3498_vm9, %vm3500_vm6  ;;  %3508 = vadd.xlane.f32.xlu1 %v3507_v3 }
 0x654   : > { %vm3504_vm11 = vmor %vm3496_vm8, %vm3502_vm10  ;;  %v4132_v2 = vand.u32 4294901760, %v6717_v61 }
 0x655   : > { %v3506_v8 = vsel %vm3504_vm11, 1.0, %v6319_v60 }
 0x656   : > { %v3510_v9 = vsel %vm361_vm0, %v3506_v8, 0.0  ;;  %v4133_v7 = vsub.f32 %v6717_v61, %v4132_v2 }
 0x657   : > { %3511 = vadd.xlane.f32.xlu1 %v3510_v9 }
 0x6dc   : > { %v3509_v23 = vpop.xlane.xlu1 %3508 }
 0x6dd   : > { %vm3513_vm13 = vcmp.lt.f32.partialorder %v3509_v23, 8.0 }
 0x6de   : > { %v3515_v25 = vsel %vm3513_vm13, 1.0, %v6319_v60 }
 0x6df   : > { %v3519_v11 = vmul.f32 %v6250_v24, %v3515_v25 }
 0x6e0   : > { %v3512_v16 = vpop.xlane.xlu1 %3511 }
 0x6e1   : > { %v3521_v27 = vmul.f32 0.125, %v3519_v11  ;;  %vm3514_vm14 = vcmp.lt.f32.partialorder %v3512_v16, 8.0  ;;  %v4134_v11 = vand.u32 4294901760, %v4133_v7  ;;  %v6753_v16 = vand.u32 4294901760, %v5549_v19 }
 0x6e2   : > { %v3516_v4 = vsel %vm3514_vm14, 1.0, %v6319_v60 }
 0x6e3   : > { %v3520_v30 = vmul.f32 %v6252_v29, %v3516_v4  ;;  %v3524_v31 = vmul.f32 %v3521_v27, %v6519_v50  ;;  %v4000_v32 = vmul.f32 %v3521_v27, %v6595_v28  ;;  %v6766_v4 = vsub.f32 %v5549_v19, %v6753_v16 }
 0x6e5   : > { %v3522_v5 = vmul.f32 0.125, %v3520_v30  ;;  %v3526_v35 = vsel %vm361_vm0, %v3524_v31, 0.0  ;;  %v4002_v36 = vsel %vm361_vm0, %v4000_v32, 0.0 }
 0x6e7   : > { %v3525_v33 = vmul.f32 %v3522_v5, %v6515_v47  ;;  %v4001_v34 = vmul.f32 %v3522_v5, %v6591_v26  ;;  %v4478_v28 = vmul.f32 %v3522_v5, %v3412_v41  ;;  %v5547_v47 = vld [vmem:[%s7019_s6 + $0x18] sm:$0xff]  ;;  %v4477_v26 = vmul.f32 %v3521_v27, %v3411_v44 }
 0x6e8   : > { %v6707_v55 = vand.u32 4294901760, %v5547_v47  ;;  %v4602_v5 = vand.u32 4294901760, %v6766_v4 }
 0x6e9   : > { %v3527_v37 = vsel %vm361_vm0, %v3525_v33, 0.0  ;;  %v4003_v39 = vsel %vm361_vm0, %v4001_v34, 0.0  ;;  %v4480_v56 = vsel %vm361_vm0, %v4478_v28, 0.0  ;;  %v4479_v58 = vsel %vm361_vm0, %v4477_v26, 0.0  ;;  %v4957_v28 = vld [vmem:[%s7021_s8 + $0x10] sm:$0xff] }
 0x6ea   : > { %v3528_v40 = vadd.f32 %v3527_v37, %v3526_v35  ;;  %v4004_v43 = vadd.f32 %v4003_v39, %v4002_v36  ;;  %v4481_v59 = vadd.f32 %v4480_v56, %v4479_v58  ;;  %v6714_v42 = vsub.f32 %v5547_v47, %v6707_v55  ;;  %v4955_v56 = vld [vmem:[%s7021_s8] sm:$0xff] }
 0x6eb   : > { %v6879_v26 = vand.u32 4294901760, %v4957_v28  ;;  %v6904_v58 = vand.u32 4294901760, %v4955_v56 }
 0x6ec   : > { %v3529_v45 = vrot.slane %v3528_v40, 4  ;;  %v4005_v46 = vrot.slane %v4004_v43, 4  ;;  %v4482_v63 = vrot.slane %v4481_v59, 4  ;;  %v4125_v18 = vand.u32 4294901760, %v6714_v42 }
 0x6ee   : > { %v3530_v50 = vadd.f32 %v3529_v45, %v3528_v40  ;;  %v4006_v51 = vadd.f32 %v4005_v46, %v4004_v43  ;;  %v4483_v8 = vadd.f32 %v4482_v63, %v4481_v59  ;;  %v4126_v12 = vsub.f32 %v6714_v42, %v4125_v18 }
 0x6f0   : > { %v3531_v53 = vrot.slane %v3530_v50, 2  ;;  %v4007_v49 = vrot.slane %v4006_v51, 2  ;;  %v4127_v23 = vand.u32 4294901760, %v4126_v12  ;;  %v4484_v24 = vrot.slane %v4483_v8, 2 }
 0x6f2   : > { %v3532_v57 = vadd.f32 %v3531_v53, %v3530_v50  ;;  %v4008_v41 = vadd.f32 %v4007_v49, %v4006_v51  ;;  %v4485_v27 = vadd.f32 %v4484_v24, %v4483_v8  ;;  %v4958_v50 = vld [vmem:[%s7021_s8 + $0x18] sm:$0xff]  ;;  %v4956_v53 = vld [vmem:[%s7021_s8 + $0x8] sm:$0xff]  ;;  %v6888_v49 = vsub.f32 %v4957_v28, %v6879_v26 }
 0x6f3   : > { %v6871_v51 = vand.u32 4294901760, %v4958_v50 }
 0x6f4   : > { %v3533_v48 = vrot.slane %v3532_v57, 1  ;;  %v4009_v62 = vrot.slane %v4008_v41, 1  ;;  %v4486_v31 = vrot.slane %v4485_v27, 1 }
 0x6f5   : > { %v6877_v47 = vsub.f32 %v4958_v50, %v6871_v51 }
 0x6f6   : > { %v3534_v44 = vadd.f32 %v3533_v48, %v3532_v57  ;;  %v4010_v3 = vadd.f32 %v4009_v62, %v4008_v41 }
 0x6f7   : > { %v5070_v54 = vand.u32 4294901760, %v6877_v47 }
 0x6f8   : > { %v3538_v52 = vsel %vm361_vm0, %v3534_v44, 0  ;;  %v4015_v10 = vsel %vm361_vm0, %v4010_v3, 0  ;;  %v6913_v44 = vsub.f32 %v4955_v56, %v6904_v58 }
 0x6f9   : > { %v6720_v0 = vand.u32 4294901760, %v3538_v52  ;;  %v6747_v25 = vand.u32 4294901760, %v4015_v10  ;;  %v5071_v57 = vsub.f32 %v6877_v47, %v5070_v54 }
 0x6fb   : > { %v3608_v1 = vsub.f32 %v3538_v52, %v6720_v0  ;;  %6028 = vmatmul.mubr.f32.vlgmr.msra.gmra.mxu1 %v6720_v0  ;;  %v4085_v29 = vsub.f32 %v4015_v10, %v6747_v25  ;;  %v5072_v48 = vand.u32 4294901760, %v5071_v57  ;;  %v5091_v52 = vand.u32 4294901760, %v6913_v44 }
 0x6fc   : > { %6038 = vmatpush3.msra.mxu1 %v6656_v15  ;;  %6041 = vmatprep.mubr.msk.f32.mxu1 %vm6320_vm12, %v6319_v60 }
 0x6fd   : > { %6039 = vmatprep.subr.mxu1 %v6319_v60  ;;  %v3609_v9 = vand.u32 4294901760, %v3608_v1  ;;  %v4086_v32 = vand.u32 4294901760, %v4085_v29 }
 0x6fe   : > { %6040 = vmatpush3.msra.mxu1 %v6661_v17 }
 0x6ff   : > { %6042 = vmatmul.mubr.f32.vlgmr.msra.gmra.mxu1 %v3609_v9  ;;  %6051 = vmatprep.subr.mxu1 %v6319_v60  ;;  %v3610_v14 = vsub.f32 %v3608_v1, %v3609_v9  ;;  %v4087_v33 = vsub.f32 %v4085_v29, %v4086_v32 }
 0x700   : > { %6052 = vmatpush3.msra.mxu1 %v6656_v15  ;;  %6055 = vmatprep.mubr.msk.f32.mxu1 %vm6320_vm12, %v6319_v60  ;;  %v5548_v15 = vld [vmem:[%s7019_s6 + $0x20] sm:$0xff] }
 0x701   : > { %6053 = vmatprep.subr.mxu1 %v6319_v60  ;;  %v3611_v13 = vand.u32 4294901760, %v3610_v14  ;;  %v4088_v35 = vand.u32 4294901760, %v4087_v33 }
 0x702   : > { %6054 = vmatpush3.msra.mxu1 %v6661_v17  ;;  %v6758_v17 = vand.u32 4294901760, %v5548_v15 }
 0x703   : > { %6021 = vmatmul.mubr.f32.vlgmr.msra.gmra.mxu0 %v3611_v13  ;;  %6056 = vmatmul.mubr.f32.vlgmr.msra.gmra.mxu1 %v6720_v0 }
 0x704   : > { %6065 = vmatprep.subr.mxu1 %v6319_v60  ;;  %6031 = vmatpush3.msra.mxu0 %v6668_v20  ;;  %v6773_v30 = vsub.f32 %v5548_v15, %v6758_v17 }
 0x705   : > { %6066 = vmatpush3.msra.mxu1 %v4127_v23  ;;  %6032 = vmatprep.subr.mxu0 %v6319_v60 }
 0x706   : > { %6067 = vmatprep.subr.mxu1 %v6319_v60  ;;  %6033 = vmatpush3.msra.mxu0 %v6672_v21  ;;  %v4609_v20 = vand.u32 4294901760, %v6773_v30  ;;  %v4603_v21 = vsub.f32 %v6766_v4, %v4602_v5 }
 0x707   : > { %6034 = vmatprep.mubr.msk.f32.mxu0 %vm6320_vm12, %v6319_v60  ;;  %6068 = vmatpush3.msra.mxu1 %v4134_v11 }
 0x708   : > { %6069 = vmatprep.mubr.msk.f32.mxu1 %vm6320_vm12, %v6319_v60  ;;  %6035 = vmatmul.mubr.f32.vlgmr.msra.gmra.mxu0 %v3608_v1  ;;  %v4604_v36 = vand.u32 4294901760, %v4603_v21 }
 0x709   : > { %6044 = vmatprep.subr.mxu0 %v6319_v60  ;;  %6070 = vmatmul.mubr.f32.vlgmr.msra.gmra.mxu1 %v6747_v25 }
 0x70a   : > { %6079 = vmatprep.subr.mxu1 %v6319_v60  ;;  %6045 = vmatpush3.msra.mxu0 %v3648_v22  ;;  %v4487_v22 = vadd.f32 %v4486_v31, %v4485_v27 }
 0x70b   : > { %6080 = vmatpush3.msra.mxu1 %v6707_v55  ;;  %6046 = vmatprep.subr.mxu0 %v6319_v60 }
 0x70c   : > { %6081 = vmatprep.subr.mxu1 %v6319_v60  ;;  %6047 = vmatpush3.msra.mxu0 %v3655_v6  ;;  %v4610_v6 = vsub.f32 %v6773_v30, %v4609_v20  ;;  %v4492_v34 = vsel %vm361_vm0, %v4487_v22, 0  ;;  %vm5449_vm0 = vcmask 24576  }
 0x70d   : > { %6048 = vmatprep.mubr.msk.f32.mxu0 %vm6320_vm12, %v6319_v60  ;;  %6082 = vmatpush3.msra.mxu1 %v6710_v38  ;;  %v4561_v37 = vand.u32 4294901760, %v4492_v34 }
 0x70e   : > { %6083 = vmatprep.mubr.msk.f32.mxu1 %vm6320_vm12, %v6319_v60  ;;  %6049 = vmatmul.mubr.f32.vlgmr.msra.gmra.mxu0 %v6720_v0  ;;  %v4611_v39 = vand.u32 4294901760, %v4610_v6  ;;  %v5092_v0 = vsub.f32 %v6913_v44, %v5091_v52 }
 0x70f   : > { %6058 = vmatprep.subr.mxu0 %v6319_v60  ;;  %6084 = vmatmul.mubr.f32.vlgmr.msra.gmra.mxu1 %v4086_v32  ;;  %v4562_v40 = vsub.f32 %v4492_v34, %v4561_v37 }
 0x710   : > { %6093 = vmatprep.subr.mxu1 %v6319_v60  ;;  %6059 = vmatpush3.msra.mxu0 %v6707_v55 }
 0x711   : > { %6094 = vmatpush3.msra.mxu1 %v6707_v55  ;;  %6060 = vmatprep.subr.mxu0 %v6319_v60  ;;  %v4563_v43 = vand.u32 4294901760, %v4562_v40  ;;  %v6890_v55 = vand.u32 4294901760, %v4956_v53 }
 0x712   : > { %6095 = vmatprep.subr.mxu1 %v6319_v60  ;;  %6061 = vmatpush3.msra.mxu0 %v6710_v38 }
 0x713   : > { %6062 = vmatprep.mubr.msk.f32.mxu0 %vm6320_vm12, %v6319_v60  ;;  %6096 = vmatpush3.msra.mxu1 %v6710_v38  ;;  %v4564_v45 = vsub.f32 %v4562_v40, %v4563_v43  ;;  %v5077_v38 = vand.u32 4294901760, %v6888_v49  ;;  %v6902_v41 = vsub.f32 %v4956_v53, %v6890_v55 }
 0x714   : > { %6097 = vmatprep.mubr.msk.f32.mxu1 %vm6320_vm12, %v6319_v60  ;;  %6063 = vmatmul.mubr.f32.vlgmr.msra.gmra.mxu0 %v4088_v35 }
 0x715   : > { %6072 = vmatprep.subr.mxu0 %v6319_v60  ;;  %6098 = vmatmul.mubr.f32.vlgmr.msra.gmra.mxu1 %v6747_v25  ;;  %v4565_v46 = vand.u32 4294901760, %v4564_v45  ;;  %v5078_v59 = vsub.f32 %v6888_v49, %v5077_v38 }
 0x716   : > { %6107 = vmatprep.subr.mxu1 %v6319_v60  ;;  %6073 = vmatpush3.msra.mxu0 %v6714_v42  ;;  %v5084_v42 = vand.u32 4294901760, %v6902_v41 }
 0x717   : > { %6108 = vmatpush3.msra.mxu1 %v4604_v36  ;;  %6074 = vmatprep.subr.mxu0 %v6319_v60 }
 0x718   : > { %6109 = vmatprep.subr.mxu1 %v6319_v60  ;;  %6075 = vmatpush3.msra.mxu0 %v6717_v61  ;;  %v5079_v61 = vand.u32 4294901760, %v5078_v59  ;;  %v5085_v62 = vsub.f32 %v6902_v41, %v5084_v42 }
 0x719   : > { %6076 = vmatprep.mubr.msk.f32.mxu0 %vm6320_vm12, %v6319_v60  ;;  %6110 = vmatpush3.msra.mxu1 %v4611_v39 }
 0x71a   : > { %6111 = vmatprep.mubr.msk.f32.mxu1 %vm6320_vm12, %v6319_v60  ;;  %6077 = vmatmul.mubr.f32.vlgmr.msra.gmra.mxu0 %v4085_v29  ;;  %v5086_v63 = vand.u32 4294901760, %v5085_v62 }
 0x71b   : > { %6086 = vmatprep.subr.mxu0 %v6319_v60  ;;  %6112 = vmatmul.mubr.f32.vlgmr.msra.gmra.mxu1 %v4561_v37 }
 0x71c   : > { %6121 = vmatprep.subr.mxu1 %v6319_v60  ;;  %6087 = vmatpush3.msra.mxu0 %v4125_v18  ;;  %v5093_v18 = vand.u32 4294901760, %v5092_v0 }
 0x71d   : > { %6122 = vmatpush3.msra.mxu1 %v6753_v16  ;;  %6088 = vmatprep.subr.mxu0 %v6319_v60 }
 0x71e   : > { %6123 = vmatprep.subr.mxu1 %v6319_v60  ;;  %6089 = vmatpush3.msra.mxu0 %v4132_v2 }
 0x71f   : > { %6090 = vmatprep.mubr.msk.f32.mxu0 %vm6320_vm12, %v6319_v60  ;;  %6124 = vmatpush3.msra.mxu1 %v6758_v17 }
 0x720   : > { %6125 = vmatprep.mubr.msk.f32.mxu1 %vm6320_vm12, %v6319_v60  ;;  %6091 = vmatmul.mubr.f32.vlgmr.msra.gmra.mxu0 %v6747_v25 }
 0x721   : > { %6100 = vmatprep.subr.mxu0 %v6319_v60  ;;  %6126 = vmatmul.mubr.f32.vlgmr.msra.gmra.mxu1 %v4563_v43 }
 0x722   : > { %6135 = vmatprep.subr.mxu1 %v6319_v60  ;;  %6101 = vmatpush3.msra.mxu0 %v6753_v16 }
 0x723   : > { %6136 = vmatpush3.msra.mxu1 %v6753_v16  ;;  %6102 = vmatprep.subr.mxu0 %v6319_v60 }
 0x724   : > { %6137 = vmatprep.subr.mxu1 %v6319_v60  ;;  %6103 = vmatpush3.msra.mxu0 %v6758_v17 }
 0x725   : > { %6104 = vmatprep.mubr.msk.f32.mxu0 %vm6320_vm12, %v6319_v60  ;;  %6138 = vmatpush3.msra.mxu1 %v6758_v17 }
 0x726   : > { %6139 = vmatprep.mubr.msk.f32.mxu1 %vm6320_vm12, %v6319_v60  ;;  %6105 = vmatmul.mubr.f32.vlgmr.msra.gmra.mxu0 %v4565_v46 }
 0x727   : > { %6114 = vmatprep.subr.mxu0 %v6319_v60  ;;  %6140 = vmatmul.mubr.f32.vlgmr.msra.gmra.mxu1 %v4561_v37 }
 0x728   : > { %6115 = vmatpush3.msra.mxu0 %v6766_v4  ;;  %6118 = vmatprep.mubr.msk.f32.mxu0 %vm6320_vm12, %v6319_v60 }
 0x729   : > { %6116 = vmatprep.subr.mxu0 %v6319_v60  ;;  %6153 = vmatprep.subr.mxu1 %v6319_v60 }
 0x72a   : > { %6117 = vmatpush3.msra.mxu0 %v6773_v30  ;;  %6161 = vmatprep.mubr.msk.f32.mxu1 %vm6320_vm12, %v6319_v60 }
 0x72b   : > { %6119 = vmatmul.mubr.f32.vlgmr.msra.gmra.mxu0 %v4562_v40  ;;  %6128 = vmatprep.subr.mxu0 %v6319_v60 }
 0x72c   : > { %6129 = vmatpush3.msra.mxu0 %v4602_v5  ;;  %6132 = vmatprep.mubr.msk.f32.mxu0 %vm6320_vm12, %v6319_v60 }
 0x72d   : > { %6130 = vmatprep.subr.mxu0 %v6319_v60  ;;  %6154 = vmatpush3.msra.mxu1 %v5072_v48  ;;  %v3523_v48 = vld [vmem:[%s7020_s7] sm:$0x1] }
 0x72e   : > { %6131 = vmatpush3.msra.mxu0 %v4609_v20  ;;  %6155 = vmatprep.subr.mxu1 %v6319_v60 }
 0x72f   : > { %6133 = vmatmul.mubr.f32.vlgmr.msra.gmra.mxu0 %v4561_v37  ;;  %6142 = vmatprep.subr.mxu0 %v6319_v60 }
 0x730   : > { %6150 = vmatprep.mubr.msk.f32.mxu0 %vm6320_vm12, %v6319_v60  ;;  %6143 = vmatpush3.msra.mxu0 %v6871_v51 }
 0x731   : > { %6144 = vmatprep.subr.mxu0 %v6319_v60  ;;  %6156 = vmatpush3.msra.mxu1 %v5079_v61 }
 0x732   : > { %6145 = vmatpush3.msra.mxu0 %v6879_v26  ;;  %6157 = vmatprep.subr.mxu1 %v6319_v60 }
 0x733   : > { %6146 = vmatprep.subr.mxu0 %v6319_v60  ;;  %6158 = vmatpush3.msra.mxu1 %v5086_v63 }
 0x734   : > { %6147 = vmatpush3.msra.mxu0 %v6890_v55  ;;  %6159 = vmatprep.subr.mxu1 %v6319_v60 }
 0x735   : > { %6148 = vmatprep.subr.mxu0 %v6319_v60  ;;  %6160 = vmatpush3.msra.mxu1 %v5093_v18 }
 0x736   : > { %6149 = vmatpush3.msra.mxu0 %v6904_v58  ;;  %6175 = vmatprep.subr.mxu1 %v6319_v60 }
 0x737   : > { %6164 = vmatprep.subr.mxu0 %v6319_v60 }
 0x7bb   : > { %v3694_v1 = vpop.f32.mrf.mxu1 }
 0x7bd   : > { %v6029_v2 = vpop.f32.mrf.mxu1 }
 0x7bf   : > { %v3845_v3 = vpop.f32.mrf.mxu1 }
 0x7c1   : > { %v6043_v8 = vpop.f32.mrf.mxu1 }
 0x7c3   : > { %v3613_v9 = vpop.f32.mrf.mxu0  ;;  %v3995_v12 = vpop.f32.mrf.mxu1 }
 0x7c4   : > { %v3695_v5 = vadd.f32 %v3694_v1, %v3613_v9 }
 0x7c5   : > { %v6022_v14 = vpop.f32.mrf.mxu0  ;;  %v6057_v7 = vpop.f32.mrf.mxu1 }
 0x7c8   : > { %v3770_v10 = vpop.f32.mrf.mxu0 }
 0x7c9   : > { %v4171_v19 = vpop.f32.mrf.mxu1  ;;  %v3771_v20 = vadd.f32 %v3770_v10, %v3695_v5 }
 0x7ca   : > { %v6036_v13 = vpop.f32.mrf.mxu0 }
 0x7cb   : > { %v6071_v23 = vpop.f32.mrf.mxu1  ;;  %v3846_v36 = vadd.f32 %v3845_v3, %v3771_v20 }
 0x7ce   : > { %v3922_v24 = vpop.f32.mrf.mxu0 }
 0x7cf   : > { %v4322_v25 = vpop.f32.mrf.mxu1  ;;  %v3923_v43 = vadd.f32 %v3922_v24, %v3846_v36 }
 0x7d0   : > { %v6050_v15 = vpop.f32.mrf.mxu0 }
 0x7d1   : > { %v6085_v11 = vpop.f32.mrf.mxu1  ;;  %v3996_v56 = vadd.f32 %v3995_v12, %v3923_v43 }
 0x7d3   : > { %v3999_v0 = vadd.f32 %v3996_v56, %v3523_v48 }
 0x7d4   : > { %v4090_v16 = vpop.f32.mrf.mxu0 }
 0x7d5   : > { %v4472_v17 = vpop.f32.mrf.mxu1  ;;  %v4172_v22 = vadd.f32 %v4171_v19, %v4090_v16 }
 0x7d6   : > { %v6064_v27 = vpop.f32.mrf.mxu0 }
 0x7d7   : > { %v6099_v29 = vpop.f32.mrf.mxu1 }
 0x7da   : > { %v4247_v4 = vpop.f32.mrf.mxu0 }
 0x7db   : > { %v4648_v30 = vpop.f32.mrf.mxu1  ;;  %v4248_v6 = vadd.f32 %v4247_v4, %v4172_v22 }
 0x7dc   : > { %v6078_v31 = vpop.f32.mrf.mxu0 }
 0x7dd   : > { %v6113_v32 = vpop.f32.mrf.mxu1  ;;  %v4323_v37 = vadd.f32 %v4322_v25, %v4248_v6 }
 0x7e0   : > { %v4399_v33 = vpop.f32.mrf.mxu0 }
 0x7e1   : > { %v4799_v21 = vpop.f32.mrf.mxu1  ;;  %v4400_v50 = vadd.f32 %v4399_v33, %v4323_v37 }
 0x7e2   : > { %v6092_v34 = vpop.f32.mrf.mxu0 }
 0x7e3   : > { %v6127_v35 = vpop.f32.mrf.mxu1  ;;  %v4473_v61 = vadd.f32 %v4472_v17, %v4400_v50 }
 0x7e5   : > { %v4476_v2 = vadd.f32 %v4473_v61, %v3999_v0 }
 0x7e6   : > { %v4567_v39 = vpop.f32.mrf.mxu0 }
 0x7e7   : > { %v4949_v40 = vpop.f32.mrf.mxu1  ;;  %v4649_v28 = vadd.f32 %v4648_v30, %v4567_v39 }
 0x7e8   : > { %v6106_v45 = vpop.f32.mrf.mxu0 }
 0x7e9   : > { %v6141_v46 = vpop.f32.mrf.mxu1 }
 0x7eb   : > { %v4724_v53 = vpop.f32.mrf.mxu0 }
 0x7ec   : > { %v4725_v57 = vadd.f32 %v4724_v53, %v4649_v28 }
 0x7ed   : > { %v6120_v59 = vpop.f32.mrf.mxu0 }
 0x7ee   : > { %v4800_v62 = vadd.f32 %v4799_v21, %v4725_v57 }
 0x7ef   : > { %v4876_v63 = vpop.f32.mrf.mxu0 }
 0x7f0   : > { %v4877_v18 = vadd.f32 %v4876_v63, %v4800_v62 }
 0x7f1   : > { %v6134_v1 = vpop.f32.mrf.mxu0 }
 0x7f2   : > { %v4950_v3 = vadd.f32 %v4949_v40, %v4877_v18 }
 0x7f4   : > { %v4953_v8 = vadd.f32 %v4950_v3, %v4476_v2 }
 0x7f6   : > { %v4954_v9 = vmax.f32 %v4953_v8, 0.0 }
 0x7f8   : > { %v4962_v14 = vsel %vm4960_vm15, %v4954_v9, 0 }
 0x7f9   : > { %v5033_v7 = vand.u32 4294901760, %v4962_v14 }
 0x7fb   : > { %6162 = vmatmul.mubr.f32.vlgmr.msra.gmra.mxu1 %v5033_v7  ;;  %v5034_v12 = vsub.f32 %v4962_v14, %v5033_v7 }
 0x7fc   : > { %6176 = vmatpush3.msra.mxu1 %v6871_v51  ;;  %6183 = vmatprep.mubr.msk.f32.mxu1 %vm6320_vm12, %v6319_v60 }
 0x7fd   : > { %6177 = vmatprep.subr.mxu1 %v6319_v60  ;;  %v5035_v10 = vand.u32 4294901760, %v5034_v12 }
 0x7fe   : > { %6178 = vmatpush3.msra.mxu1 %v6879_v26 }
 0x7ff   : > { %6179 = vmatprep.subr.mxu1 %v6319_v60  ;;  %v5036_v19 = vsub.f32 %v5034_v12, %v5035_v10 }
 0x800   : > { %6180 = vmatpush3.msra.mxu1 %v6890_v55 }
 0x801   : > { %6181 = vmatprep.subr.mxu1 %v6319_v60  ;;  %v5037_v13 = vand.u32 4294901760, %v5036_v19 }
 0x802   : > { %6182 = vmatpush3.msra.mxu1 %v6904_v58 }
 0x803   : > { %6184 = vmatmul.mubr.f32.vlgmr.msra.gmra.mxu1 %v5035_v10  ;;  %6197 = vmatprep.subr.mxu1 %v6319_v60 }
 0x804   : > { %6151 = vmatmul.mubr.f32.vlgmr.msra.gmra.mxu0 %v5037_v13  ;;  %6198 = vmatpush3.msra.mxu1 %v6871_v51 }
 0x805   : > { %6165 = vmatpush3.msra.mxu0 %v6877_v47  ;;  %6199 = vmatprep.subr.mxu1 %v6319_v60 }
 0x806   : > { %6166 = vmatprep.subr.mxu0 %v6319_v60  ;;  %6200 = vmatpush3.msra.mxu1 %v6879_v26 }
 0x807   : > { %6167 = vmatpush3.msra.mxu0 %v6888_v49  ;;  %6201 = vmatprep.subr.mxu1 %v6319_v60  ;;  %v4959_v49 = vld [vmem:[%s7022_s9] sm:$0x1] }
 0x808   : > { %6168 = vmatprep.subr.mxu0 %v6319_v60  ;;  %6202 = vmatpush3.msra.mxu1 %v6890_v55 }
 0x809   : > { %6169 = vmatpush3.msra.mxu0 %v6902_v41  ;;  %6203 = vmatprep.subr.mxu1 %v6319_v60 }
 0x80a   : > { %6170 = vmatprep.subr.mxu0 %v6319_v60  ;;  %6172 = vmatprep.mubr.msk.f32.mxu0 %vm6320_vm12, %v6319_v60 }
 0x80b   : > { %6171 = vmatpush3.msra.mxu0 %v6913_v44  ;;  %6204 = vmatpush3.msra.mxu1 %v6904_v58 }
 0x80c   : > { %6205 = vmatprep.mubr.msk.f32.mxu1 %vm6320_vm12, %v6319_v60  ;;  %6173 = vmatmul.mubr.f32.vlgmr.msra.gmra.mxu0 %v5034_v12 }
 0x80d   : > { %6186 = vmatprep.subr.mxu0 %v6319_v60  ;;  %6206 = vmatmul.mubr.f32.vlgmr.msra.gmra.mxu1 %v5033_v7 }
 0x80e   : > { %6187 = vmatpush3.msra.mxu0 %v5070_v54  ;;  %6194 = vmatprep.mubr.msk.f32.mxu0 %vm6320_vm12, %v6319_v60 }
 0x80f   : > { %6188 = vmatprep.subr.mxu0 %v6319_v60 }
 0x810   : > { %6189 = vmatpush3.msra.mxu0 %v5077_v38 }
 0x811   : > { %6190 = vmatprep.subr.mxu0 %v6319_v60 }
 0x812   : > { %6191 = vmatpush3.msra.mxu0 %v5084_v42 }
 0x813   : > { %6192 = vmatprep.subr.mxu0 %v6319_v60 }
 0x814   : > { %6193 = vmatpush3.msra.mxu0 %v5091_v52 }
 0x815   : > { %6195 = vmatmul.mubr.f32.vlgmr.msra.gmra.mxu0 %v5033_v7 }
 0x8bb   : > { %v5130_v51 = vpop.f32.mrf.mxu1 }
 0x8bd   : > { %v6163_v47 = vpop.f32.mrf.mxu1 }
 0x8c3   : > { %v5287_v26 = vpop.f32.mrf.mxu1 }
 0x8c4   : > { %v5039_v54 = vpop.f32.mrf.mxu0 }
 0x8c5   : > { %v6185_v55 = vpop.f32.mrf.mxu1  ;;  %v5040_v38 = vadd.f32 %v5039_v54, %v4959_v49 }
 0x8c6   : > { %v6152_v58 = vpop.f32.mrf.mxu0 }
 0x8c7   : > { %v5131_v42 = vadd.f32 %v5130_v51, %v5040_v38 }
 0x8cc   : > { %v5210_v23 = vpop.f32.mrf.mxu0 }
 0x8cd   : > { %v5445_v41 = vpop.f32.mrf.mxu1  ;;  %v5211_v25 = vadd.f32 %v5210_v23, %v5131_v42 }
 0x8ce   : > { %v6174_v24 = vpop.f32.mrf.mxu0 }
 0x8cf   : > { %v6207_v60 = vpop.f32.mrf.mxu1  ;;  %v5288_v44 = vadd.f32 %v5287_v26, %v5211_v25 }
 0x8d5   : > { %v5370_v52 = vpop.f32.mrf.mxu0 }
 0x8d6   : > { %v5371_v15 = vadd.f32 %v5370_v52, %v5288_v44 }
 0x8d7   : > { %v6196_v11 = vpop.f32.mrf.mxu0 }
 0x8d8   : > { %v5446_v16 = vadd.f32 %v5445_v41, %v5371_v15 }
 0x8da   : > { %v5450_v17 = vsel %vm5449_vm0, %v5446_v16, -inf }
 0x8db   : > { %5451 = vmax.xlane.f32.xlu1 %v5450_v17 }
 0x964   : > { %v5452_v27 = vpop.xlane.xlu1 %5451 }
 0x965   : > { %v5453_v29 = vsub.f32 %v5446_v16, %v5452_v27 }
 0x967   : > { %v5454_v4 = vmul.f32 1.442695, %v5453_v29 }
 0x969   : > { %6253 = vpow2.f32 %v5454_v4 }
 0x976   : > { %v6254_v30 = vpop.eup %6253 }
 0x977   : > { %v5456_v31 = vsel %vm5449_vm0, %v6254_v30, 0.0 }
 0x978   : > { %5457 = vadd.xlane.f32.xlu1 %v5456_v31 }
 0xa01   : > { %v5458_v32 = vpop.xlane.xlu1 %5457 }
 0xa02   : > { %6255 = vlog2.f32 %v5458_v32 }
 0xa0f   : > { %v6256_v5 = vpop.eup %6255 }
 0xa10   : > { %v5460_v20 = vmul.f32 0.6931472, %v6256_v5 }
 0xa12   : > { %v5461_v22 = vadd.f32 %v5460_v20, %v5452_v27 }
 0xa14   : > { %v5462_v33 = vsub.f32 %v5446_v16, %v5461_v22 }
 0xa16   : > { %5463 = vst.msk [vmem:[%s351_s27] sm:$0x1] %vm5449_vm0, %v5462_v33 }
 0xa17   : > { %6270 = shalt.err (!%p6267_p3)
}
 0xa18   : > { %s6271_s29 = scalar_lea.hbm %s5475_s11, 16  ;;  %s6275_s27 = scalar_lea.hbm %s7023_s10, 32 }
 0xa19   : > { %p6272_p4 = scmp.ne.s32.totalorder %s5475_s11, %s6271_s29  ;;  %p6276_p9 = scmp.lt.s32.totalorder %s5475_s11, %s7023_s10 }
 0xa1a   : > { %p6277_p10 = scmp.lt.s32.totalorder %s6275_s27, %s6271_s29 }
 0xa1b   : > { %p6273_p7 = pnand %p6272_p4, %p6415_p5 }
 0xa1c   : > { %p6278_p11 = por %p6277_p10, %p6276_p9 }
 0xa1d   : > { %p6274_p8 = pneg %p6273_p7 }
 0xa1f   : > { %p6279_p12 = pnand %p6278_p11, %p6274_p8 }
 0xa21   : > { %6282 = shalt.err (!%p6279_p12)
}
 0xa22   : > { %6208 = dma.vmem_to_hbm [thread:$0]  (%p6415_p5), %s5478_s28, 16, %s5475_s11, %s5465_s12  }
 0xa23 PF: > { %p6214_p13 = scmp.ge.s32.totalorder %s6317_s16, 2  ;;  %s5489_s18 = sand.u32 1, %s6305_s13  }
 0xa24   : > { %s5490_s20 = scalar_lea.sflag [#allocation3], %s5489_s18 }
 0xa25   : > { %p6211_p0 = pnand %p6214_p13, %p6419_p6 }
 0xa27   : > { %p6212_p1 = pneg %p6211_p0 }
 0xa29   : > { %6300 = dma.done.wait (%p6212_p1), %s5490_s20, 16  }
 0xa2a   : > { %6302 = vsyncadd (%p6212_p1), %s5490_s20, 4294967280  ;;  %p20_p2 = scmp.ge.s32.totalorder %s6402_s19, 4   ;;  %s7028_s13 = smov %s6309_s14 }
 0xa2b   : > { %s7029_s14 = smov %s6313_s15  ;;  %s7030_s15 = smov %s6413_s22 }
 0xa2c   : > { %s7031_s16 = smov %s6402_s19  ;;  %22 = sbr.rel (!%p20_p2) target bundleno = 5 (0x5), region = 98 }
 0xa31   :  { %5494 = vsyncpa [#allocation3], 1 }
 0xa32   :  { %5496 = vsyncpa [#allocation3 + $0x1], 1 }

</bundles_post_ra>
